<compile_context>
chip_gen: v7x
topology: tpu7x:2x2x1
jax: 0.10.0
libtpu: 0.0.40
codegen_flags: <defaults>
</compile_context>

<pallas_src>
import jax
import jax.numpy as jnp
from jax import lax
from jax.experimental import pallas as pl
from jax.experimental.pallas import tpu as pltpu

LN_EPS = 1e-5
MiB = 1024 * 1024


def edge_model_kernel(x_ref, w1_ref, b1_ref, gamma_ref, beta_ref,
                      alpha_ref, w2_ref, b2_ref, o_ref):
    # Linear 1: single fused K=3H MXU dot.  LHS is cast to the weight dtype
    # (bf16) on the VPU here -- the HBM stream stays f32.
    h = jnp.dot(x_ref[...].astype(w1_ref.dtype), w1_ref[...],
                preferred_element_type=jnp.float32)
    h = h + b1_ref[...]                                     # (tm, 2H) f32

    # LayerNorm over the last dim (eps = 1e-5), f32, centered two-pass form.
    n_inv = 1.0 / h.shape[-1]
    mean = jnp.sum(h, axis=-1, keepdims=True) * n_inv       # (tm, 1)
    c = h - mean                                            # (tm, 2H)
    var = jnp.sum(c * c, axis=-1, keepdims=True) * n_inv    # (tm, 1)
    rstd = lax.rsqrt(var + LN_EPS)                          # (tm, 1)
    hn = c * rstd * gamma_ref[...] + beta_ref[...]          # (tm, 2H)

    # PReLU with a single shared alpha (scalar read from SMEM).
    alpha = alpha_ref[0]
    hp = jnp.where(hn > 0, hn, alpha * hn)

    # Linear 2: (tm, 2H) @ (2H, Hout_pad) + (1, Hout_pad).  Hout_pad is a
    # multiple of 128 -> lane-dense, unmasked output stores.
    out = jnp.dot(hp.astype(w2_ref.dtype), w2_ref[...],
                  preferred_element_type=jnp.float32) + b2_ref[...]
    o_ref[...] = out.astype(o_ref.dtype)


def _vmem_bytes_estimate(tm, H, Hout_pad, mm_bytes):
    """Working-set estimate.  Row tiles are double-buffered; grid-invariant
    weights are counted ONCE (single-buffered via pl.Buffered(1))."""
    f32 = 4
    tiles = 2 * (tm * 3 * H * f32 + tm * Hout_pad * f32)       # x in, out
    temps = 3 * tm * 2 * H * f32                                # h / c / hn
    weights = ((3 * H * 2 * H + 2 * H * Hout_pad) * mm_bytes
               + (3 * 2 * H + Hout_pad) * f32)
    return weights + int(1.3 * (tiles + temps))


def _shrink_tm_for_vmem(tm, H, Hout_pad, mm_bytes, budget_bytes):
    while tm > 256 and _vmem_bytes_estimate(tm, H, Hout_pad, mm_bytes) > budget_bytes:
        tm //= 2
    return tm


def _const_spec(shape):
    """Grid-invariant block: single-buffered when the jax version supports it."""
    idx = lambda i: (0, 0)
    try:
        return pl.BlockSpec(shape, idx, pipeline_mode=pl.Buffered(1))
    except TypeError:  # older BlockSpec without pipeline_mode kwarg
        return pl.BlockSpec(shape, idx)


def edge_model(src, dest, edge_attr, params, *, tm=None,
               matmul_dtype=jnp.bfloat16, out_dtype=None):
    """Runs EdgeModel forward.  src/dest/edge_attr: (E, H) float32."""
    w1, b1, gamma, beta, alpha, w2, b2 = params
    E, H = src.shape
    Hout = w2.shape[1]
    out_dtype = src.dtype if out_dtype is None else jnp.dtype(out_dtype)

    # --- concat once (same materialization the PyTorch module does) --------
    x = jnp.concatenate([src.astype(jnp.float32),
                         dest.astype(jnp.float32),
                         edge_attr.astype(jnp.float32)], axis=1)   # (E, 3H) f32

    # --- elementwise params in f32; PReLU alpha -> SMEM scalar --------------
    b1 = b1.reshape(1, -1).astype(jnp.float32)
    gamma = gamma.reshape(1, -1).astype(jnp.float32)
    beta = beta.reshape(1, -1).astype(jnp.float32)
    b2 = b2.reshape(1, -1).astype(jnp.float32)
    alpha = alpha.reshape(-1).astype(jnp.float32)                   # (1,)

    # --- lane-dense output: pad Hout to a multiple of 128 (always) ----------
    Hout_pad = max(128, pl.cdiv(Hout, 128) * 128)
    if Hout_pad != Hout:
        w2 = jnp.pad(w2, ((0, 0), (0, Hout_pad - Hout)))
        b2 = jnp.pad(b2, ((0, 0), (0, Hout_pad - Hout)))

    # --- weights wrapper-cast to the matmul dtype (loaded once) -------------
    mm = jnp.dtype(matmul_dtype)
    w1c = w1.astype(mm)                                             # (3H, 2H)
    w2c = w2.astype(mm)                                             # (2H, Hout_pad)

    # --- per-generation VMEM budget ------------------------------------------
    try:
        vmem_cap = pltpu.get_tpu_info().vmem_capacity_bytes
    except Exception:  # be conservative (v7x per-core VMEM) if query fails
        vmem_cap = 64 * MiB
    budget = max(16 * MiB, vmem_cap // 2)               # ~32 MiB v7x, ~64 MiB v5e/v6e
    vmem_limit = int(min(0.625 * vmem_cap, 96 * MiB))   # ~40 MiB v7x, ~80 MiB v5e/v6e

    # --- row tiling: target pipelining depth, large-tile floor ---------------
    if tm is None:
        tm = pl.next_power_of_2(max(1, pl.cdiv(E, 8)))   # ~8 grid steps when E allows
        tm = min(1024, max(256, tm))
    tm = max(8, ((tm + 7) // 8) * 8)                     # sublane alignment
    tm = _shrink_tm_for_vmem(tm, H, Hout_pad, mm.itemsize, budget)

    # --- pad ragged edge counts ----------------------------------------------
    E_pad = pl.cdiv(E, tm) * tm
    if E_pad != E:
        x = jnp.pad(x, ((0, E_pad - E), (0, 0)))

    grid = (E_pad // tm,)

    out = pl.pallas_call(
        edge_model_kernel,
        out_shape=jax.ShapeDtypeStruct((E_pad, Hout_pad), out_dtype),
        grid_spec=pltpu.PrefetchScalarGridSpec(
            num_scalar_prefetch=0,
            grid=grid,
            in_specs=[
                pl.BlockSpec((tm, 3 * H), lambda i: (i, 0)),        # x (f32)
                _const_spec((3 * H, 2 * H)),                        # W1 (bf16)
                _const_spec((1, 2 * H)),                            # b1
                _const_spec((1, 2 * H)),                            # LN gamma
                _const_spec((1, 2 * H)),                            # LN beta
                pl.BlockSpec(memory_space=pltpu.MemorySpace.SMEM),  # PReLU alpha
                _const_spec((2 * H, Hout_pad)),                     # W2 (bf16)
                _const_spec((1, Hout_pad)),                         # b2
            ],
            out_specs=pl.BlockSpec((tm, Hout_pad), lambda i: (i, 0)),
        ),
        compiler_params=pltpu.CompilerParams(
            dimension_semantics=("parallel",),
            vmem_limit_bytes=vmem_limit,
        ),
    )(x, w1c, b1, gamma, beta, alpha, w2c, b2)

    if E_pad != E or Hout_pad != Hout:
        out = out[:E, :Hout]
    return out


def init_params(key, n_hidden):
    k1, k2 = jax.random.split(key)
    H = n_hidden
    # Deterministic synthetic init (not a checkpoint load).
    w1 = jax.random.normal(k1, (3 * H, 2 * H), jnp.float32) / jnp.sqrt(3.0 * H)
    b1 = jnp.zeros((1, 2 * H), jnp.float32)
    gamma = jnp.ones((1, 2 * H), jnp.float32)       # LayerNorm weight
    beta = jnp.zeros((1, 2 * H), jnp.float32)       # LayerNorm bias
    alpha = jnp.full((1,), 0.25, jnp.float32)       # PReLU default init
    w2 = jax.random.normal(k2, (2 * H, H), jnp.float32) / jnp.sqrt(2.0 * H)
    b2 = jnp.zeros((1, H), jnp.float32)
    return (w1, b1, gamma, beta, alpha, w2, b2)


def edge_model_ref(src, dest, edge_attr, params):
    """Pure f32 JAX reference matching the PyTorch module."""
    w1, b1, gamma, beta, alpha, w2, b2 = params
    x = jnp.concatenate([src, dest, edge_attr], axis=1)
    h = x @ w1 + b1
    mean = jnp.mean(h, axis=-1, keepdims=True)
    var = jnp.mean((h - mean) ** 2, axis=-1, keepdims=True)
    hn = (h - mean) / jnp.sqrt(var + LN_EPS) * gamma + beta
    hp = jnp.where(hn > 0, hn, alpha[0] * hn)
    return hp @ w2 + b2


if __name__ == "__main__":
    key = jax.random.PRNGKey(0)
    k_src, k_dst, k_ea, k_param = jax.random.split(key, 4)

    n_hidden = 32    # H
    n_edges = 200    # E — deliberately NOT a multiple of the tile (ragged path)

    src = jax.random.normal(k_src, (n_edges, n_hidden), jnp.float32)
    dest = jax.random.normal(k_dst, (n_edges, n_hidden), jnp.float32)
    edge_attr = jax.random.normal(k_ea, (n_edges, n_hidden), jnp.float32)
    params = init_params(k_param, n_hidden)

    out = jax.block_until_ready(edge_model(src, dest, edge_attr, params))

    ref = edge_model_ref(src, dest, edge_attr, params)
    assert out.shape == (n_edges, n_hidden)
    # bf16 matmul operands (f32 accumulation) -> loosened tolerance vs f32 ref.
    assert jnp.allclose(out, ref, atol=5e-2, rtol=5e-2), "mismatch vs JAX reference"

    print("KERNEL_OK")
</pallas_src>

<mosaic_0001>
module attributes {stable_mosaic.version = 11 : i64} {
  func.func @edge_model_kernel(%arg0: i32, %arg1: memref<256x96xf32, #tpu.memory_space<vmem>>, %arg2: memref<96x64xbf16, #tpu.memory_space<vmem>>, %arg3: memref<1x64xf32, #tpu.memory_space<vmem>>, %arg4: memref<1x64xf32, #tpu.memory_space<vmem>>, %arg5: memref<1x64xf32, #tpu.memory_space<vmem>>, %arg6: memref<1xf32, #tpu.memory_space<smem>>, %arg7: memref<64x128xbf16, #tpu.memory_space<vmem>>, %arg8: memref<1x128xf32, #tpu.memory_space<vmem>>, %arg9: memref<256x128xf32, #tpu.memory_space<vmem>>) attributes {dimension_semantics = [#tpu.dimension_semantics<parallel>], iteration_bounds = array<i64: 1>, scalar_prefetch = 0 : i64, scratch_operands = 0 : i64, tpu.core_type = #tpu.core_type<tc>, window_params = [{transform_indices = @transform_0, window_bounds = array<i64: 256, 96>}, {pipeline_mode = #tpu.pipeline_mode<synchronous>, transform_indices = @transform_1, window_bounds = array<i64: 96, 64>}, {pipeline_mode = #tpu.pipeline_mode<synchronous>, transform_indices = @transform_2, window_bounds = array<i64: 1, 64>}, {pipeline_mode = #tpu.pipeline_mode<synchronous>, transform_indices = @transform_3, window_bounds = array<i64: 1, 64>}, {pipeline_mode = #tpu.pipeline_mode<synchronous>, transform_indices = @transform_4, window_bounds = array<i64: 1, 64>}, {transform_indices = @transform_5, window_bounds = array<i64: 1>}, {pipeline_mode = #tpu.pipeline_mode<synchronous>, transform_indices = @transform_6, window_bounds = array<i64: 64, 128>}, {pipeline_mode = #tpu.pipeline_mode<synchronous>, transform_indices = @transform_7, window_bounds = array<i64: 1, 128>}, {transform_indices = @transform_8, window_bounds = array<i64: 256, 128>}]} {
    %c0 = arith.constant 0 : index
    %c0_0 = arith.constant 0 : index
    %0 = vector.load %arg1[%c0, %c0_0] : memref<256x96xf32, #tpu.memory_space<vmem>>, vector<256x96xf32>
    %1 = arith.truncf %0 : vector<256x96xf32> to vector<256x96xbf16>
    %c0_1 = arith.constant 0 : index
    %c0_2 = arith.constant 0 : index
    %2 = vector.load %arg2[%c0_1, %c0_2] : memref<96x64xbf16, #tpu.memory_space<vmem>>, vector<96x64xbf16>
    %cst = arith.constant dense<0.000000e+00> : vector<256x64xf32>
    %3 = tpu.matmul %1, %2, %cst {dimension_numbers = #tpu.dot_dimension_numbers<[1], [0], [0], [1], [0, 0, 1, 1], [], []>} : vector<256x96xbf16>, vector<96x64xbf16>, vector<256x64xf32> -> vector<256x64xf32>
    %c0_3 = arith.constant 0 : index
    %c0_4 = arith.constant 0 : index
    %4 = vector.load %arg3[%c0_3, %c0_4] : memref<1x64xf32, #tpu.memory_space<vmem>>, vector<1x64xf32>
    %5 = vector.broadcast %4 : vector<1x64xf32> to vector<256x64xf32>
    %6 = arith.addf %3, %5 : vector<256x64xf32>
    %cst_5 = arith.constant dense<0.000000e+00> : vector<256xf32>
    %7 = vector.multi_reduction <add>, %6, %cst_5 [1] : vector<256x64xf32> to vector<256xf32>
    %8 = vector.shape_cast %7 : vector<256xf32> to vector<256x1xf32>
    %cst_6 = arith.constant 1.562500e-02 : f32
    %9 = vector.broadcast %cst_6 : f32 to vector<256x1xf32>
    %10 = arith.mulf %8, %9 : vector<256x1xf32>
    %11 = vector.broadcast %10 : vector<256x1xf32> to vector<256x64xf32>
    %12 = arith.subf %6, %11 : vector<256x64xf32>
    %13 = arith.mulf %12, %12 : vector<256x64xf32>
    %cst_7 = arith.constant dense<0.000000e+00> : vector<256xf32>
    %14 = vector.multi_reduction <add>, %13, %cst_7 [1] : vector<256x64xf32> to vector<256xf32>
    %15 = vector.shape_cast %14 : vector<256xf32> to vector<256x1xf32>
    %cst_8 = arith.constant 1.562500e-02 : f32
    %16 = vector.broadcast %cst_8 : f32 to vector<256x1xf32>
    %17 = arith.mulf %15, %16 : vector<256x1xf32>
    %cst_9 = arith.constant 9.99999974E-6 : f32
    %18 = vector.broadcast %cst_9 : f32 to vector<256x1xf32>
    %19 = arith.addf %17, %18 : vector<256x1xf32>
    %20 = math.rsqrt %19 : vector<256x1xf32>
    %21 = vector.broadcast %20 : vector<256x1xf32> to vector<256x64xf32>
    %22 = arith.mulf %12, %21 : vector<256x64xf32>
    %c0_10 = arith.constant 0 : index
    %c0_11 = arith.constant 0 : index
    %23 = vector.load %arg4[%c0_10, %c0_11] : memref<1x64xf32, #tpu.memory_space<vmem>>, vector<1x64xf32>
    %24 = vector.broadcast %23 : vector<1x64xf32> to vector<256x64xf32>
    %25 = arith.mulf %22, %24 : vector<256x64xf32>
    %c0_12 = arith.constant 0 : index
    %c0_13 = arith.constant 0 : index
    %26 = vector.load %arg5[%c0_12, %c0_13] : memref<1x64xf32, #tpu.memory_space<vmem>>, vector<1x64xf32>
    %27 = vector.broadcast %26 : vector<1x64xf32> to vector<256x64xf32>
    %28 = arith.addf %25, %27 : vector<256x64xf32>
    %c0_14 = arith.constant 0 : index
    %29 = memref.load %arg6[%c0_14] : memref<1xf32, #tpu.memory_space<smem>>
    %cst_15 = arith.constant 0.000000e+00 : f32
    %30 = vector.broadcast %cst_15 : f32 to vector<256x64xf32>
    %31 = arith.cmpf ogt, %28, %30 : vector<256x64xf32>
    %32 = vector.broadcast %29 : f32 to vector<256x64xf32>
    %33 = arith.mulf %32, %28 : vector<256x64xf32>
    %34 = arith.select %31, %28, %33 : vector<256x64xi1>, vector<256x64xf32>
    %35 = arith.truncf %34 : vector<256x64xf32> to vector<256x64xbf16>
    %c0_16 = arith.constant 0 : index
    %c0_17 = arith.constant 0 : index
    %36 = vector.load %arg7[%c0_16, %c0_17] : memref<64x128xbf16, #tpu.memory_space<vmem>>, vector<64x128xbf16>
    %cst_18 = arith.constant dense<0.000000e+00> : vector<256x128xf32>
    %37 = tpu.matmul %35, %36, %cst_18 {dimension_numbers = #tpu.dot_dimension_numbers<[1], [0], [0], [1], [0, 0, 1, 1], [], []>} : vector<256x64xbf16>, vector<64x128xbf16>, vector<256x128xf32> -> vector<256x128xf32>
    %c0_19 = arith.constant 0 : index
    %c0_20 = arith.constant 0 : index
    %38 = vector.load %arg8[%c0_19, %c0_20] : memref<1x128xf32, #tpu.memory_space<vmem>>, vector<1x128xf32>
    %39 = vector.broadcast %38 : vector<1x128xf32> to vector<256x128xf32>
    %40 = arith.addf %37, %39 : vector<256x128xf32>
    %c0_21 = arith.constant 0 : index
    %c0_22 = arith.constant 0 : index
    %41 = vector.load %arg9[%c0_21, %c0_22] : memref<256x128xf32, #tpu.memory_space<vmem>>, vector<256x128xf32>
    tpu.vector_store %arg9[%c0_21, %c0_22], %40 {strides = array<i32>} : memref<256x128xf32, #tpu.memory_space<vmem>>, vector<256x128xf32>,
    return
  }
  func.func @transform_0(%arg0: i32) -> (i32, i32) {
    %c0_i32 = arith.constant 0 : i32
    %c0_i32_0 = arith.constant 0 : i32
    return %arg0, %c0_i32 : i32, i32
  }
  func.func @transform_1(%arg0: i32) -> (i32, i32) {
    %c0_i32 = arith.constant 0 : i32
    %c0_i32_0 = arith.constant 0 : i32
    %c0_i32_1 = arith.constant 0 : i32
    return %c0_i32, %c0_i32_0 : i32, i32
  }
  func.func @transform_2(%arg0: i32) -> (i32, i32) {
    %c0_i32 = arith.constant 0 : i32
    %c0_i32_0 = arith.constant 0 : i32
    %c0_i32_1 = arith.constant 0 : i32
    return %c0_i32, %c0_i32_0 : i32, i32
  }
  func.func @transform_3(%arg0: i32) -> (i32, i32) {
    %c0_i32 = arith.constant 0 : i32
    %c0_i32_0 = arith.constant 0 : i32
    %c0_i32_1 = arith.constant 0 : i32
    return %c0_i32, %c0_i32_0 : i32, i32
  }
  func.func @transform_4(%arg0: i32) -> (i32, i32) {
    %c0_i32 = arith.constant 0 : i32
    %c0_i32_0 = arith.constant 0 : i32
    %c0_i32_1 = arith.constant 0 : i32
    return %c0_i32, %c0_i32_0 : i32, i32
  }
  func.func @transform_5(%arg0: i32) -> i32 {
    %c0_i32 = arith.constant 0 : i32
    %c0_i32_0 = arith.constant 0 : i32
    return %c0_i32 : i32
  }
  func.func @transform_6(%arg0: i32) -> (i32, i32) {
    %c0_i32 = arith.constant 0 : i32
    %c0_i32_0 = arith.constant 0 : i32
    %c0_i32_1 = arith.constant 0 : i32
    return %c0_i32, %c0_i32_0 : i32, i32
  }
  func.func @transform_7(%arg0: i32) -> (i32, i32) {
    %c0_i32 = arith.constant 0 : i32
    %c0_i32_0 = arith.constant 0 : i32
    %c0_i32_1 = arith.constant 0 : i32
    return %c0_i32, %c0_i32_0 : i32, i32
  }
  func.func @transform_8(%arg0: i32) -> (i32, i32) {
    %c0_i32 = arith.constant 0 : i32
    %c0_i32_0 = arith.constant 0 : i32
    return %arg0, %c0_i32 : i32, i32
  }
}

</mosaic_0001>

<bundles_post_ra>
// kernel: tpu_custom_call.1
= control target key start
LH: loop header
LB: loop body
LE: loop exit
PB: predicated region body
PF: predicated region fallthrough
CT: control target
= control target key end

     0   :  { %vm135_vm0 = vcmask 785408   ;;  %s2305_s0 = inlined_call_operand.vmem [shape: f32[256,96], index: 0, kind: input, shape index: {}]   ;;  %s2306_s1 = inlined_call_operand.vmem [shape: bf16[96,64], index: 1, kind: input, shape index: {}]   ;;  %s2307_s2 = inlined_call_operand.vmem [shape: f32[1,64], index: 2, kind: input, shape index: {}]   ;;  %s2308_s3 = inlined_call_operand.vmem [shape: f32[1,64], index: 3, kind: input, shape index: {}]   ;;  %s2309_s4 = inlined_call_operand.vmem [shape: f32[1,64], index: 4, kind: input, shape index: {}]   ;;  %s2310_s5 = inlined_call_operand.<no memory space> [shape: f32[1], index: 5, kind: input, shape index: {}]   ;;  %s2311_s6 = inlined_call_operand.vmem [shape: bf16[64,128], index: 6, kind: input, shape index: {}]   ;;  %s2312_s7 = inlined_call_operand.vmem [shape: f32[1,128], index: 7, kind: input, shape index: {}]   ;;  %s2313_s8 = inlined_call_operand.hbm [shape: f32[256,128], index: 8, kind: output, shape index: {}]  }
   0x1   :  { %v1425_v0 = vld [vmem:[%s2306_s1] sm:$0xff]   ;;  %v1426_v1 = vld [vmem:[%s2306_s1 + $0x8] sm:$0xff]   ;;  %v1427_v2 = vld [vmem:[%s2306_s1 + $0x10] sm:$0xff]  }
   0x2   :  { %1338 = vmatprep.subr.bf16.mxu0 %v1425_v0  ;;  %v32_v3 = vld [vmem:[%s2305_s0] sm:$0xff]  ;;  %v33_v4 = vld [vmem:[%s2305_s0 + $0x8] sm:$0xff]  ;;  %v1428_v6 = vld [vmem:[%s2306_s1 + $0x18] sm:$0xff]  }
   0x3   :  { %1339 = vmatpush3.bf16.msra.mxu0 %v1425_v0  ;;  %v64_v5 = vpack.c.bf16 %v33_v4, %v32_v3  ;;  %v1429_v7 = vld [vmem:[%s2306_s1 + $0x20] sm:$0xff]   ;;  %v1430_v8 = vld [vmem:[%s2306_s1 + $0x28] sm:$0xff]   ;;  %v34_v9 = vld [vmem:[%s2305_s0 + $0x10] sm:$0xff] }
   0x4   :  { %1340 = vmatprep.subr.bf16.mxu0 %v1426_v1  ;;  %v35_v10 = vld [vmem:[%s2305_s0 + $0x18] sm:$0xff] }
   0x5   :  { %1350 = vmatprep.mubr.msk.bf16.mxu0 %vm135_vm0, %v64_v5 }
   0x7   :  { %1341 = vmatpush3.bf16.msra.mxu0 %v1426_v1 }
   0x8   :  { %1342 = vmatprep.subr.bf16.mxu0 %v1427_v2 }
   0xb   :  { %1343 = vmatpush3.bf16.msra.mxu0 %v1427_v2 }
   0xc   :  { %1344 = vmatprep.subr.bf16.mxu0 %v1428_v6 }
   0xf   :  { %1345 = vmatpush3.bf16.msra.mxu0 %v1428_v6 }
  0x10   :  { %1346 = vmatprep.subr.bf16.mxu0 %v1429_v7 }
  0x13   :  { %1347 = vmatpush3.bf16.msra.mxu0 %v1429_v7 }
  0x14   :  { %14 = vsyncpa [#allocation4], 0  ;;  %1348 = vmatprep.subr.bf16.mxu0 %v1430_v8  ;;  %v36_v11 = vld [vmem:[%s2305_s0 + $0x20] sm:$0xff]  ;;  %v37_v12 = vld [vmem:[%s2305_s0 + $0x28] sm:$0xff]  ;;  %v65_v13 = vpack.c.bf16 %v35_v10, %v34_v9  ;;  %vm345_vm1 = vcmask 523264  }
  0x15   :  { %v66_v14 = vpack.c.bf16 %v37_v12, %v36_v11  ;;  %v38_v15 = vld [vmem:[%s2305_s0 + $0x30] sm:$0xff]  ;;  %v39_v16 = vld [vmem:[%s2305_s0 + $0x38] sm:$0xff]  ;;  %v40_v17 = vld [vmem:[%s2305_s0 + $0x40] sm:$0xff] }
  0x16   :  { %v41_v18 = vld [vmem:[%s2305_s0 + $0x48] sm:$0xff]  ;;  %v67_v19 = vpack.c.bf16 %v39_v16, %v38_v15  ;;  %v42_v21 = vld [vmem:[%s2305_s0 + $0x50] sm:$0xff]  ;;  %v43_v22 = vld [vmem:[%s2305_s0 + $0x58] sm:$0xff] }
  0x17   :  { %1349 = vmatpush3.bf16.msra.mxu0 %v1430_v8  ;;  %v68_v20 = vpack.c.bf16 %v41_v18, %v40_v17  ;;  %v44_v23 = vld [vmem:[%s2305_s0 + $0x60] sm:$0xff]  ;;  %v45_v24 = vld [vmem:[%s2305_s0 + $0x68] sm:$0xff]  ;;  %v69_v25 = vpack.c.bf16 %v43_v22, %v42_v21  ;;  %v46_v27 = vld [vmem:[%s2305_s0 + $0x70] sm:$0xff] }
  0x18   :  { %v70_v26 = vpack.c.bf16 %v45_v24, %v44_v23  ;;  %v47_v28 = vld [vmem:[%s2305_s0 + $0x78] sm:$0xff]  ;;  %v48_v29 = vld [vmem:[%s2305_s0 + $0x80] sm:$0xff]  ;;  %v49_v30 = vld [vmem:[%s2305_s0 + $0x88] sm:$0xff] }
  0x19   :  { %v71_v31 = vpack.c.bf16 %v47_v28, %v46_v27  ;;  %v72_v32 = vpack.c.bf16 %v49_v30, %v48_v29  ;;  %v50_v33 = vld [vmem:[%s2305_s0 + $0x90] sm:$0xff]  ;;  %v51_v34 = vld [vmem:[%s2305_s0 + $0x98] sm:$0xff]  ;;  %v52_v35 = vld [vmem:[%s2305_s0 + $0xa0] sm:$0xff] }
  0x1a   :  { %1351 = vmatmul.mubr.msk.bf16.vlgmr.msra.gmra.mrb[0].mxu0 %vm135_vm0, %v65_v13  ;;  %v53_v36 = vld [vmem:[%s2305_s0 + $0xa8] sm:$0xff]  ;;  %v73_v37 = vpack.c.bf16 %v51_v34, %v50_v33  ;;  %v54_v39 = vld [vmem:[%s2305_s0 + $0xb0] sm:$0xff]  ;;  %v55_v40 = vld [vmem:[%s2305_s0 + $0xb8] sm:$0xff] }
  0x1b   :  { %1354 = vmatprep.mubr.msk.bf16.mxu0 %vm135_vm0, %v66_v14  ;;  %v74_v38 = vpack.c.bf16 %v53_v36, %v52_v35  ;;  %v56_v41 = vld [vmem:[%s2305_s0 + $0xc0] sm:$0xff]  ;;  %v57_v42 = vld [vmem:[%s2305_s0 + $0xc8] sm:$0xff]  ;;  %v75_v43 = vpack.c.bf16 %v55_v40, %v54_v39  ;;  %v58_v45 = vld [vmem:[%s2305_s0 + $0xd0] sm:$0xff] }
  0x1c   :  { %v76_v44 = vpack.c.bf16 %v57_v42, %v56_v41  ;;  %v59_v46 = vld [vmem:[%s2305_s0 + $0xd8] sm:$0xff]  ;;  %v60_v47 = vld [vmem:[%s2305_s0 + $0xe0] sm:$0xff]  ;;  %v61_v48 = vld [vmem:[%s2305_s0 + $0xe8] sm:$0xff] }
  0x1d   :  { %v77_v49 = vpack.c.bf16 %v59_v46, %v58_v45  ;;  %v78_v50 = vpack.c.bf16 %v61_v48, %v60_v47  ;;  %v62_v51 = vld [vmem:[%s2305_s0 + $0xf0] sm:$0xff]  ;;  %v63_v52 = vld [vmem:[%s2305_s0 + $0xf8] sm:$0xff]  ;;  %v1704_v54 = vld [vmem:[%s2307_s2] ss:$0 sm:$0xff] }
  0x1e   :  { %v79_v53 = vpack.c.bf16 %v63_v52, %v62_v51 }
  0x22   :  { %1355 = vmatmul.mubr.msk.bf16.gmra.mrb[4].mxu0 %vm135_vm0, %v67_v19 }
  0x23   :  { %1358 = vmatprep.mubr.msk.bf16.mxu0 %vm135_vm0, %v68_v20 }
  0x2a   :  { %1359 = vmatmul.mubr.msk.bf16.gmra.mrb[8].mxu0 %vm135_vm0, %v69_v25 }
  0x2b   :  { %1362 = vmatprep.mubr.msk.bf16.mxu0 %vm135_vm0, %v70_v26 }
  0x32   :  { %1363 = vmatmul.mubr.msk.bf16.gmra.mrb[12].mxu0 %vm135_vm0, %v71_v31 }
  0x33   :  { %1366 = vmatprep.mubr.msk.bf16.mxu0 %vm135_vm0, %v72_v32 }
  0x3a   :  { %1367 = vmatmul.mubr.msk.bf16.gmra.mrb[16].mxu0 %vm135_vm0, %v73_v37 }
  0x3b   :  { %1370 = vmatprep.mubr.msk.bf16.mxu0 %vm135_vm0, %v74_v38 }
  0x42   :  { %1371 = vmatmul.mubr.msk.bf16.gmra.mrb[20].mxu0 %vm135_vm0, %v75_v43 }
  0x43   :  { %1374 = vmatprep.mubr.msk.bf16.mxu0 %vm135_vm0, %v76_v44 }
  0x4a   :  { %1375 = vmatmul.mubr.msk.bf16.gmra.mrb[24].mxu0 %vm135_vm0, %v77_v49 }
  0x4b   :  { %1378 = vmatprep.mubr.msk.bf16.mxu0 %vm135_vm0, %v78_v50 }
  0x52   :  { %1379 = vmatmul.mubr.msk.bf16.gmra.mrb[28].mxu0 %vm135_vm0, %v79_v53 }
  0xed   :  { %v1352_v55 = vpop.f32.mrb[0].mxu0 }
  0xee   :  { %v1707_v56 = vadd.f32 %v1352_v55, %v1704_v54  ;;  %v218_v57 = vpop.f32.mrb[1].mxu0 }
  0xef   :  { %v1710_v58 = vadd.f32 %v1704_v54, %v218_v57  ;;  %v1353_v59 = vpop.f32.mrb[2].mxu0 }
  0xf0   :  { %v1713_v60 = vadd.f32 %v1353_v59, %v1704_v54  ;;  %v221_v61 = vpop.f32.mrb[3].mxu0  ;;  %v352_v62 = vsel %vm345_vm1, %v1707_v56, 0.0 }
  0xf1   :  { %v1718_v63 = vadd.f32 %v1704_v54, %v221_v61  ;;  %353 = vadd.xlane.f32.xlu1 %v352_v62  ;;  %v346_v0 = vsel %vm345_vm1, %v1710_v58, 0.0 }
  0xf2   :  { %347 = vadd.xlane.f32.xlu0 %v346_v0  ;;  %v355_v1 = vsel %vm345_vm1, %v1713_v60, 0.0 }
  0xf3   :  { %v349_v3 = vsel %vm345_vm1, %v1718_v63, 0.0 }
  0xf5   :  { %356 = vadd.xlane.f32.xlu1 %v355_v1  ;;  %v1356_v2 = vpop.f32.mrb[4].mxu0 }
  0xf6   :  { %v234_v4 = vpop.f32.mrb[5].mxu0  ;;  %350 = vadd.xlane.f32.xlu0 %v349_v3  ;;  %v1730_v8 = vadd.f32 %v1356_v2, %v1704_v54 }
  0xf7   :  { %v1727_v5 = vadd.f32 %v1704_v54, %v234_v4  ;;  %v1357_v6 = vpop.f32.mrb[6].mxu0 }
  0xf8   :  { %v237_v7 = vpop.f32.mrb[7].mxu0  ;;  %v1738_v11 = vadd.f32 %v1357_v6, %v1704_v54  ;;  %v364_v14 = vsel %vm345_vm1, %v1730_v8, 0.0 }
  0xf9   :  { %v1733_v9 = vadd.f32 %v1704_v54, %v237_v7  ;;  %v358_v10 = vsel %vm345_vm1, %v1727_v5, 0.0 }
  0xfa   :  { %359 = vadd.xlane.f32.xlu0 %v358_v10  ;;  %v367_v18 = vsel %vm345_vm1, %v1738_v11, 0.0 }
  0xfb   :  { %v361_v12 = vsel %vm345_vm1, %v1733_v9, 0.0 }
  0xfc   :  { %362 = vadd.xlane.f32.xlu1 %v361_v12 }
  0xfd   :  { %v1360_v13 = vpop.f32.mrb[8].mxu0 }
  0xfe   :  { %v250_v15 = vpop.f32.mrb[9].mxu0  ;;  %365 = vadd.xlane.f32.xlu0 %v364_v14  ;;  %v1750_v20 = vadd.f32 %v1360_v13, %v1704_v54 }
  0xff   :  { %v1745_v16 = vadd.f32 %v1704_v54, %v250_v15  ;;  %v1361_v17 = vpop.f32.mrb[10].mxu0 }
 0x100   :  { %v253_v19 = vpop.f32.mrb[11].mxu0  ;;  %368 = vadd.xlane.f32.xlu1 %v367_v18  ;;  %v1758_v23 = vadd.f32 %v1361_v17, %v1704_v54  ;;  %v376_v26 = vsel %vm345_vm1, %v1750_v20, 0.0 }
 0x101   :  { %v1753_v21 = vadd.f32 %v1704_v54, %v253_v19  ;;  %v370_v22 = vsel %vm345_vm1, %v1745_v16, 0.0 }
 0x102   :  { %371 = vadd.xlane.f32.xlu0 %v370_v22  ;;  %v379_v30 = vsel %vm345_vm1, %v1758_v23, 0.0 }
 0x103   :  { %v373_v24 = vsel %vm345_vm1, %v1753_v21, 0.0 }
 0x104   :  { %374 = vadd.xlane.f32.xlu1 %v373_v24 }
 0x105   :  { %v1364_v25 = vpop.f32.mrb[12].mxu0 }
 0x106   :  { %v266_v27 = vpop.f32.mrb[13].mxu0  ;;  %377 = vadd.xlane.f32.xlu0 %v376_v26  ;;  %v1770_v32 = vadd.f32 %v1364_v25, %v1704_v54 }
 0x107   :  { %v1765_v28 = vadd.f32 %v1704_v54, %v266_v27  ;;  %v1365_v29 = vpop.f32.mrb[14].mxu0 }
 0x108   :  { %v269_v31 = vpop.f32.mrb[15].mxu0  ;;  %380 = vadd.xlane.f32.xlu1 %v379_v30  ;;  %v1778_v35 = vadd.f32 %v1365_v29, %v1704_v54  ;;  %v388_v38 = vsel %vm345_vm1, %v1770_v32, 0.0 }
 0x109   :  { %v1773_v33 = vadd.f32 %v1704_v54, %v269_v31  ;;  %v382_v34 = vsel %vm345_vm1, %v1765_v28, 0.0 }
 0x10a   :  { %383 = vadd.xlane.f32.xlu0 %v382_v34  ;;  %v391_v42 = vsel %vm345_vm1, %v1778_v35, 0.0 }
 0x10b   :  { %v385_v36 = vsel %vm345_vm1, %v1773_v33, 0.0 }
 0x10c   :  { %386 = vadd.xlane.f32.xlu1 %v385_v36 }
 0x10d   :  { %v1368_v37 = vpop.f32.mrb[16].mxu0 }
 0x10e   :  { %v282_v39 = vpop.f32.mrb[17].mxu0  ;;  %389 = vadd.xlane.f32.xlu0 %v388_v38  ;;  %v1790_v44 = vadd.f32 %v1368_v37, %v1704_v54 }
 0x10f   :  { %v1785_v40 = vadd.f32 %v1704_v54, %v282_v39  ;;  %v1369_v41 = vpop.f32.mrb[18].mxu0 }
 0x110   :  { %v285_v43 = vpop.f32.mrb[19].mxu0  ;;  %392 = vadd.xlane.f32.xlu1 %v391_v42  ;;  %v1798_v47 = vadd.f32 %v1369_v41, %v1704_v54  ;;  %v400_v50 = vsel %vm345_vm1, %v1790_v44, 0.0 }
 0x111   :  { %v1793_v45 = vadd.f32 %v1704_v54, %v285_v43  ;;  %v394_v46 = vsel %vm345_vm1, %v1785_v40, 0.0 }
 0x112   :  { %395 = vadd.xlane.f32.xlu0 %v394_v46  ;;  %v403_v55 = vsel %vm345_vm1, %v1798_v47, 0.0 }
 0x113   :  { %v397_v48 = vsel %vm345_vm1, %v1793_v45, 0.0 }
 0x114   :  { %398 = vadd.xlane.f32.xlu1 %v397_v48 }
 0x115   :  { %v1372_v49 = vpop.f32.mrb[20].mxu0 }
 0x116   :  { %v298_v51 = vpop.f32.mrb[21].mxu0  ;;  %401 = vadd.xlane.f32.xlu0 %v400_v50  ;;  %v1810_v59 = vadd.f32 %v1372_v49, %v1704_v54 }
 0x117   :  { %v1805_v52 = vadd.f32 %v1704_v54, %v298_v51  ;;  %v1373_v53 = vpop.f32.mrb[22].mxu0 }
 0x118   :  { %v301_v57 = vpop.f32.mrb[23].mxu0  ;;  %404 = vadd.xlane.f32.xlu1 %v403_v55  ;;  %v1818_v0 = vadd.f32 %v1373_v53, %v1704_v54  ;;  %v412_v3 = vsel %vm345_vm1, %v1810_v59, 0.0 }
 0x119   :  { %v1813_v61 = vadd.f32 %v1704_v54, %v301_v57  ;;  %v406_v62 = vsel %vm345_vm1, %v1805_v52, 0.0 }
 0x11a   :  { %407 = vadd.xlane.f32.xlu0 %v406_v62  ;;  %v415_v10 = vsel %vm345_vm1, %v1818_v0, 0.0 }
 0x11b   :  { %v409_v1 = vsel %vm345_vm1, %v1813_v61, 0.0 }
 0x11c   :  { %410 = vadd.xlane.f32.xlu1 %v409_v1 }
 0x11d   :  { %v1376_v2 = vpop.f32.mrb[24].mxu0 }
 0x11e   :  { %v314_v4 = vpop.f32.mrb[25].mxu0  ;;  %413 = vadd.xlane.f32.xlu0 %v412_v3  ;;  %v1830_v13 = vadd.f32 %v1376_v2, %v1704_v54 }
 0x11f   :  { %v1825_v6 = vadd.f32 %v1704_v54, %v314_v4  ;;  %v1377_v7 = vpop.f32.mrb[26].mxu0 }
 0x120   :  { %v317_v12 = vpop.f32.mrb[27].mxu0  ;;  %416 = vadd.xlane.f32.xlu1 %v415_v10  ;;  %v1838_v17 = vadd.f32 %v1377_v7, %v1704_v54  ;;  %v424_v22 = vsel %vm345_vm1, %v1830_v13, 0.0 }
 0x121   :  { %v1833_v14 = vadd.f32 %v1704_v54, %v317_v12  ;;  %v418_v15 = vsel %vm345_vm1, %v1825_v6, 0.0 }
 0x122   :  { %419 = vadd.xlane.f32.xlu0 %v418_v15  ;;  %v427_v27 = vsel %vm345_vm1, %v1838_v17, 0.0 }
 0x123   :  { %v421_v18 = vsel %vm345_vm1, %v1833_v14, 0.0 }
 0x124   :  { %422 = vadd.xlane.f32.xlu1 %v421_v18 }
 0x125   :  { %v1380_v19 = vpop.f32.mrb[28].mxu0 }
 0x126   :  { %v330_v24 = vpop.f32.mrb[29].mxu0  ;;  %425 = vadd.xlane.f32.xlu0 %v424_v22  ;;  %v1850_v30 = vadd.f32 %v1380_v19, %v1704_v54 }
 0x127   :  { %v1845_v25 = vadd.f32 %v1704_v54, %v330_v24  ;;  %v1381_v26 = vpop.f32.mrb[30].mxu0 }
 0x128   :  { %v333_v29 = vpop.f32.mrb[31].mxu0  ;;  %428 = vadd.xlane.f32.xlu1 %v427_v27  ;;  %v1858_v36 = vadd.f32 %v1381_v26, %v1704_v54  ;;  %v436_v38 = vsel %vm345_vm1, %v1850_v30, 0.0 }
 0x129   :  { %v1853_v31 = vadd.f32 %v1704_v54, %v333_v29  ;;  %v430_v34 = vsel %vm345_vm1, %v1845_v25, 0.0 }
 0x12a   :  { %431 = vadd.xlane.f32.xlu0 %v430_v34  ;;  %v439_v39 = vsel %vm345_vm1, %v1858_v36, 0.0 }
 0x12b   :  { %v433_v37 = vsel %vm345_vm1, %v1853_v31, 0.0 }
 0x12c   :  { %434 = vadd.xlane.f32.xlu1 %v433_v37 }
 0x12e   :  { %437 = vadd.xlane.f32.xlu0 %v436_v38 }
 0x130   :  { %440 = vadd.xlane.f32.xlu1 %v439_v39 }
 0x17e   :  { %v354_v41 = vpop.xlane.xlu1 %353 }
 0x17f   :  { %v444_v42 = vmul.f32 0.015625, %v354_v41  ;;  %v348_v43 = vpop.xlane.xlu0 %347 }
 0x180   :  { %v442_v46 = vmul.f32 0.015625, %v348_v43 }
 0x181   :  { %v1867_v48 = vsub.f32 %v1707_v56, %v444_v42 }
 0x182   :  { %v1870_v54 = vsub.f32 %v1710_v58, %v442_v46  ;;  %v357_v49 = vpop.xlane.xlu1 %356 }
 0x183   :  { %v445_v50 = vmul.f32 0.015625, %v357_v49  ;;  %v351_v51 = vpop.xlane.xlu0 %350  ;;  %v508_v56 = vmul.f32 %v1867_v48, %v1867_v48 }
 0x184   :  { %v443_v53 = vmul.f32 0.015625, %v351_v51  ;;  %v506_v55 = vmul.f32 %v1870_v54, %v1870_v54 }
 0x185   :  { %v1875_v57 = vsub.f32 %v1713_v60, %v445_v50  ;;  %v544_v10 = vsel %vm345_vm1, %v508_v56, 0.0 }
 0x186   :  { %v1878_v62 = vsub.f32 %v1718_v63, %v443_v53  ;;  %v538_v1 = vsel %vm345_vm1, %v506_v55, 0.0 }
 0x187   :  { %539 = vadd.xlane.f32.xlu0 %v538_v1  ;;  %v360_v58 = vpop.xlane.xlu0 %359  ;;  %v509_v7 = vmul.f32 %v1875_v57, %v1875_v57 }
 0x188   :  { %v446_v2 = vmul.f32 0.015625, %v360_v58  ;;  %v507_v3 = vmul.f32 %v1878_v62, %v1878_v62 }
 0x189   :  { %v363_v4 = vpop.xlane.xlu1 %362  ;;  %v547_v26 = vsel %vm345_vm1, %v509_v7, 0.0 }
 0x18a   :  { %v1888_v60 = vsub.f32 %v1727_v5, %v446_v2  ;;  %v447_v63 = vmul.f32 0.015625, %v363_v4  ;;  %v541_v12 = vsel %vm345_vm1, %v507_v3, 0.0 }
 0x18b   :  { %545 = vadd.xlane.f32.xlu0 %v544_v10  ;;  %542 = vadd.xlane.f32.xlu1 %v541_v12  ;;  %v366_v15 = vpop.xlane.xlu0 %365 }
 0x18c   :  { %v1893_v18 = vsub.f32 %v1733_v9, %v447_v63  ;;  %v448_v19 = vmul.f32 0.015625, %v366_v15  ;;  %v510_v22 = vmul.f32 %v1888_v60, %v1888_v60 }
 0x18d   :  { %v369_v24 = vpop.xlane.xlu1 %368 }
 0x18e   :  { %v1899_v5 = vsub.f32 %v1730_v8, %v448_v19  ;;  %v449_v27 = vmul.f32 0.015625, %v369_v24  ;;  %v550_v29 = vsel %vm345_vm1, %v510_v22, 0.0  ;;  %v511_v34 = vmul.f32 %v1893_v18, %v1893_v18 }
 0x18f   :  { %548 = vadd.xlane.f32.xlu1 %v547_v26  ;;  %551 = vadd.xlane.f32.xlu0 %v550_v29  ;;  %v372_v9 = vpop.xlane.xlu0 %371 }
 0x190   :  { %v1905_v37 = vsub.f32 %v1738_v11, %v449_v27  ;;  %v450_v38 = vmul.f32 0.015625, %v372_v9  ;;  %v512_v39 = vmul.f32 %v1899_v5, %v1899_v5  ;;  %v553_v8 = vsel %vm345_vm1, %v511_v34, 0.0 }
 0x191   :  { %v375_v41 = vpop.xlane.xlu1 %374 }
 0x192   :  { %v1911_v42 = vsub.f32 %v1745_v16, %v450_v38  ;;  %v451_v43 = vmul.f32 0.015625, %v375_v41  ;;  %v556_v46 = vsel %vm345_vm1, %v512_v39, 0.0  ;;  %v513_v49 = vmul.f32 %v1905_v37, %v1905_v37 }
 0x193   :  { %554 = vadd.xlane.f32.xlu1 %v553_v8  ;;  %557 = vadd.xlane.f32.xlu0 %v556_v46  ;;  %v378_v11 = vpop.xlane.xlu0 %377 }
 0x194   :  { %v1917_v50 = vsub.f32 %v1753_v21, %v451_v43  ;;  %v452_v51 = vmul.f32 0.015625, %v378_v11  ;;  %v514_v53 = vmul.f32 %v1911_v42, %v1911_v42  ;;  %v559_v16 = vsel %vm345_vm1, %v513_v49, 0.0 }
 0x195   :  { %v381_v55 = vpop.xlane.xlu1 %380 }
 0x196   :  { %v1923_v1 = vsub.f32 %v1750_v20, %v452_v51  ;;  %v453_v56 = vmul.f32 0.015625, %v381_v55  ;;  %v562_v58 = vsel %vm345_vm1, %v514_v53, 0.0  ;;  %v515_v2 = vmul.f32 %v1917_v50, %v1917_v50 }
 0x197   :  { %560 = vadd.xlane.f32.xlu1 %v559_v16  ;;  %563 = vadd.xlane.f32.xlu0 %v562_v58  ;;  %v384_v21 = vpop.xlane.xlu0 %383 }
 0x198   :  { %v1929_v3 = vsub.f32 %v1758_v23, %v453_v56  ;;  %v454_v4 = vmul.f32 0.015625, %v384_v21  ;;  %v516_v7 = vmul.f32 %v1923_v1, %v1923_v1  ;;  %v565_v20 = vsel %vm345_vm1, %v515_v2, 0.0 }
 0x199   :  { %v387_v63 = vpop.xlane.xlu1 %386 }
 0x19a   :  { %v1935_v10 = vsub.f32 %v1765_v28, %v454_v4  ;;  %v455_v12 = vmul.f32 0.015625, %v387_v63  ;;  %v568_v15 = vsel %vm345_vm1, %v516_v7, 0.0  ;;  %v517_v19 = vmul.f32 %v1929_v3, %v1929_v3 }
 0x19b   :  { %566 = vadd.xlane.f32.xlu1 %v565_v20  ;;  %569 = vadd.xlane.f32.xlu0 %v568_v15  ;;  %v390_v23 = vpop.xlane.xlu0 %389 }
 0x19c   :  { %v1941_v22 = vsub.f32 %v1773_v33, %v455_v12  ;;  %v456_v24 = vmul.f32 0.015625, %v390_v23  ;;  %v518_v26 = vmul.f32 %v1935_v10, %v1935_v10  ;;  %v571_v28 = vsel %vm345_vm1, %v517_v19, 0.0 }
 0x19d   :  { %v393_v27 = vpop.xlane.xlu1 %392 }
 0x19e   :  { %v1947_v29 = vsub.f32 %v1770_v32, %v456_v24  ;;  %v457_v34 = vmul.f32 0.015625, %v393_v27  ;;  %v574_v9 = vsel %vm345_vm1, %v518_v26, 0.0  ;;  %v519_v38 = vmul.f32 %v1941_v22, %v1941_v22 }
 0x19f   :  { %572 = vadd.xlane.f32.xlu1 %v571_v28  ;;  %575 = vadd.xlane.f32.xlu0 %v574_v9  ;;  %v396_v33 = vpop.xlane.xlu0 %395 }
 0x1a0   :  { %v1953_v39 = vsub.f32 %v1778_v35, %v457_v34  ;;  %v458_v41 = vmul.f32 0.015625, %v396_v33  ;;  %v520_v8 = vmul.f32 %v1947_v29, %v1947_v29  ;;  %v577_v32 = vsel %vm345_vm1, %v519_v38, 0.0 }
 0x1a1   :  { %v399_v43 = vpop.xlane.xlu1 %398 }
 0x1a2   :  { %v1959_v46 = vsub.f32 %v1785_v40, %v458_v41  ;;  %v459_v49 = vmul.f32 0.015625, %v399_v43  ;;  %v580_v11 = vsel %vm345_vm1, %v520_v8, 0.0  ;;  %v521_v51 = vmul.f32 %v1953_v39, %v1953_v39 }
 0x1a3   :  { %578 = vadd.xlane.f32.xlu1 %v577_v32  ;;  %581 = vadd.xlane.f32.xlu0 %v580_v11  ;;  %v402_v35 = vpop.xlane.xlu0 %401 }
 0x1a4   :  { %v1965_v53 = vsub.f32 %v1793_v45, %v459_v49  ;;  %v460_v55 = vmul.f32 0.015625, %v402_v35  ;;  %v522_v16 = vmul.f32 %v1959_v46, %v1959_v46  ;;  %v583_v40 = vsel %vm345_vm1, %v521_v51, 0.0  ;;  %v1431_v45 = vld [vmem:[%s2311_s6] sm:$0xff]  }
 0x1a5   :  { %v405_v56 = vpop.xlane.xlu1 %404  ;;  %1382 = vmatprep.subr.bf16.mxu1 %v1431_v45 }
 0x1a6   :  { %v1971_v58 = vsub.f32 %v1790_v44, %v460_v55  ;;  %v461_v2 = vmul.f32 0.015625, %v405_v56  ;;  %v586_v21 = vsel %vm345_vm1, %v522_v16, 0.0  ;;  %v523_v4 = vmul.f32 %v1965_v53, %v1965_v53  ;;  %1383 = vmatpush3.bf16.msra.mxu1 %v1431_v45 }
 0x1a7   :  { %584 = vadd.xlane.f32.xlu1 %v583_v40  ;;  %587 = vadd.xlane.f32.xlu0 %v586_v21  ;;  %v408_v7 = vpop.xlane.xlu0 %407 }
 0x1a8   :  { %v1980_v63 = vsub.f32 %v1798_v47, %v461_v2  ;;  %v462_v20 = vmul.f32 0.015625, %v408_v7  ;;  %v524_v44 = vmul.f32 %v1971_v58, %v1971_v58  ;;  %v589_v15 = vsel %vm345_vm1, %v523_v4, 0.0  ;;  %v1432_v47 = vld [vmem:[%s2311_s6 + $0x8] sm:$0xff]  }
 0x1a9   :  { %v411_v12 = vpop.xlane.xlu1 %410  ;;  %1384 = vmatprep.subr.bf16.mxu1 %v1432_v47 }
 0x1aa   :  { %v1986_v19 = vsub.f32 %v1805_v52, %v462_v20  ;;  %v463_v23 = vmul.f32 0.015625, %v411_v12  ;;  %v592_v24 = vsel %vm345_vm1, %v524_v44, 0.0  ;;  %v525_v26 = vmul.f32 %v1980_v63, %v1980_v63  ;;  %1385 = vmatpush3.bf16.msra.mxu1 %v1432_v47 }
 0x1ab   :  { %590 = vadd.xlane.f32.xlu1 %v589_v15  ;;  %593 = vadd.xlane.f32.xlu0 %v592_v24  ;;  %v414_v27 = vpop.xlane.xlu0 %413 }
 0x1ac   :  { %v1995_v28 = vsub.f32 %v1813_v61, %v463_v23  ;;  %v464_v34 = vmul.f32 0.015625, %v414_v27  ;;  %v526_v52 = vmul.f32 %v1986_v19, %v1986_v19  ;;  %v595_v38 = vsel %vm345_vm1, %v525_v26, 0.0  ;;  %v1433_v61 = vld [vmem:[%s2311_s6 + $0x10] sm:$0xff]  }
 0x1ad   :  { %v417_v9 = vpop.xlane.xlu1 %416  ;;  %1386 = vmatprep.subr.bf16.mxu1 %v1433_v61 }
 0x1ae   :  { %v2001_v33 = vsub.f32 %v1810_v59, %v464_v34  ;;  %v465_v41 = vmul.f32 0.015625, %v417_v9  ;;  %v598_v8 = vsel %vm345_vm1, %v526_v52, 0.0  ;;  %v527_v43 = vmul.f32 %v1995_v28, %v1995_v28  ;;  %1387 = vmatpush3.bf16.msra.mxu1 %v1433_v61 }
 0x1af   :  { %596 = vadd.xlane.f32.xlu1 %v595_v38  ;;  %599 = vadd.xlane.f32.xlu0 %v598_v8  ;;  %v420_v32 = vpop.xlane.xlu0 %419 }
 0x1b0   :  { %v2010_v49 = vsub.f32 %v1818_v0, %v465_v41  ;;  %v466_v11 = vmul.f32 0.015625, %v420_v32  ;;  %v528_v59 = vmul.f32 %v2001_v33, %v2001_v33  ;;  %v601_v35 = vsel %vm345_vm1, %v527_v43, 0.0  ;;  %v1434_v0 = vld [vmem:[%s2311_s6 + $0x18] sm:$0xff]  }
 0x1b1   :  { %v423_v51 = vpop.xlane.xlu1 %422  ;;  %1388 = vmatprep.subr.bf16.mxu1 %v1434_v0 }
 0x1b2   :  { %v2016_v55 = vsub.f32 %v1825_v6, %v466_v11  ;;  %v467_v16 = vmul.f32 0.015625, %v423_v51  ;;  %v604_v56 = vsel %vm345_vm1, %v528_v59, 0.0  ;;  %v529_v40 = vmul.f32 %v2010_v49, %v2010_v49  ;;  %1389 = vmatpush3.bf16.msra.mxu1 %v1434_v0 }
 0x1b3   :  { %602 = vadd.xlane.f32.xlu1 %v601_v35  ;;  %605 = vadd.xlane.f32.xlu0 %v604_v56  ;;  %v426_v2 = vpop.xlane.xlu0 %425 }
 0x1b4   :  { %v2025_v21 = vsub.f32 %v1833_v14, %v467_v16  ;;  %v468_v4 = vmul.f32 0.015625, %v426_v2  ;;  %v530_v6 = vmul.f32 %v2016_v55, %v2016_v55  ;;  %v607_v7 = vsel %vm345_vm1, %v529_v40, 0.0 }
 0x1b5   :  { %v429_v45 = vpop.xlane.xlu1 %428 }
 0x1b6   :  { %v2031_v20 = vsub.f32 %v1830_v13, %v468_v4  ;;  %v469_v44 = vmul.f32 0.015625, %v429_v45  ;;  %v610_v12 = vsel %vm345_vm1, %v530_v6, 0.0  ;;  %v531_v15 = vmul.f32 %v2025_v21, %v2025_v21 }
 0x1b7   :  { %608 = vadd.xlane.f32.xlu1 %v607_v7  ;;  %611 = vadd.xlane.f32.xlu0 %v610_v12  ;;  %v432_v14 = vpop.xlane.xlu0 %431 }
 0x1b8   :  { %v2037_v23 = vsub.f32 %v1838_v17, %v469_v44  ;;  %v470_v24 = vmul.f32 0.015625, %v432_v14  ;;  %v532_v26 = vmul.f32 %v2031_v20, %v2031_v20  ;;  %v613_v13 = vsel %vm345_vm1, %v531_v15, 0.0 }
 0x1b9   :  { %v435_v47 = vpop.xlane.xlu1 %434 }
 0x1ba   :  { %v2043_v27 = vsub.f32 %v1845_v25, %v470_v24  ;;  %v471_v34 = vmul.f32 0.015625, %v435_v47  ;;  %v616_v52 = vsel %vm345_vm1, %v532_v26, 0.0  ;;  %v533_v9 = vmul.f32 %v2037_v23, %v2037_v23 }
 0x1bb   :  { %614 = vadd.xlane.f32.xlu1 %v613_v13  ;;  %617 = vadd.xlane.f32.xlu0 %v616_v52  ;;  %v438_v17 = vpop.xlane.xlu0 %437 }
 0x1bc   :  { %v2049_v38 = vsub.f32 %v1853_v31, %v471_v34  ;;  %v472_v41 = vmul.f32 0.015625, %v438_v17  ;;  %v534_v8 = vmul.f32 %v2043_v27, %v2043_v27  ;;  %v619_v25 = vsel %vm345_vm1, %v533_v9, 0.0 }
 0x1bd   :  { %v441_v43 = vpop.xlane.xlu1 %440 }
 0x1be   :  { %v2055_v61 = vsub.f32 %v1850_v30, %v472_v41  ;;  %v473_v32 = vmul.f32 0.015625, %v441_v43  ;;  %v622_v11 = vsel %vm345_vm1, %v534_v8, 0.0  ;;  %v535_v59 = vmul.f32 %v2049_v38, %v2049_v38  ;;  %v2073_v41 = vld [vmem:[%s2308_s3] ss:$0 sm:$0xff] }
 0x1bf   :  { %620 = vadd.xlane.f32.xlu1 %v619_v25  ;;  %623 = vadd.xlane.f32.xlu0 %v622_v11 }
 0x1c0   :  { %v2061_v31 = vsub.f32 %v1858_v36, %v473_v32  ;;  %v536_v51 = vmul.f32 %v2055_v61, %v2055_v61  ;;  %v625_v35 = vsel %vm345_vm1, %v535_v59, 0.0 }
 0x1c2   :  { %v628_v16 = vsel %vm345_vm1, %v536_v51, 0.0  ;;  %v537_v30 = vmul.f32 %v2061_v31, %v2061_v31 }
 0x1c3   :  { %626 = vadd.xlane.f32.xlu1 %v625_v35  ;;  %629 = vadd.xlane.f32.xlu0 %v628_v16  ;;  %v2079_v35 = vld [vmem:[%s2309_s4] ss:$0 sm:$0xff] }
 0x1c4   :  { %v631_v56 = vsel %vm345_vm1, %v537_v30, 0.0 }
 0x1c7   :  { %632 = vadd.xlane.f32.xlu1 %v631_v56 }
 0x214   :  { %v540_v40 = vpop.xlane.xlu0 %539 }
 0x215   :  { %v634_v0 = vmul.f32 0.015625, %v540_v40 }
 0x217   :  { %v666_v2 = vadd.f32 1e-05, %v634_v0 }
 0x218   :  { %v543_v36 = vpop.xlane.xlu1 %542  ;;  %v546_v4 = vpop.xlane.xlu0 %545 }
 0x219   :  { %1435 = vrsqrt.f32 %v666_v2  ;;  %v635_v6 = vmul.f32 0.015625, %v543_v36  ;;  %v636_v45 = vmul.f32 0.015625, %v546_v4 }
 0x21b   :  { %v667_v7 = vadd.f32 1e-05, %v635_v6  ;;  %v668_v44 = vadd.f32 1e-05, %v636_v45  ;;  %v2087_v6 = vstv %s2310_s5 }
 0x21c   :  { %v549_v12 = vpop.xlane.xlu1 %548  ;;  %v552_v15 = vpop.xlane.xlu0 %551 }
 0x21d   :  { %1437 = vrsqrt.f32 %v667_v7  ;;  %v637_v14 = vmul.f32 0.015625, %v549_v12  ;;  %v638_v24 = vmul.f32 0.015625, %v552_v15 }
 0x21e   :  { %1439 = vrsqrt.f32 %v668_v44 }
 0x21f   :  { %v669_v26 = vadd.f32 1e-05, %v637_v14  ;;  %v670_v47 = vadd.f32 1e-05, %v638_v24 }
 0x220   :  { %v555_v13 = vpop.xlane.xlu1 %554  ;;  %v558_v34 = vpop.xlane.xlu0 %557 }
 0x221   :  { %1441 = vrsqrt.f32 %v669_v26  ;;  %v639_v52 = vmul.f32 0.015625, %v555_v13  ;;  %v640_v9 = vmul.f32 0.015625, %v558_v34 }
 0x222   :  { %1443 = vrsqrt.f32 %v670_v47 }
 0x223   :  { %v1436_v17 = vpop.eup %1435  ;;  %v671_v8 = vadd.f32 1e-05, %v639_v52  ;;  %v672_v43 = vadd.f32 1e-05, %v640_v9 }
 0x224   :  { %v561_v25 = vpop.xlane.xlu1 %560  ;;  %v564_v32 = vpop.xlane.xlu0 %563  ;;  %v730_v11 = vmul.f32 %v1436_v17, %v1870_v54 }
 0x225   :  { %1445 = vrsqrt.f32 %v671_v8  ;;  %v641_v59 = vmul.f32 0.015625, %v561_v25  ;;  %v642_v51 = vmul.f32 0.015625, %v564_v32 }
 0x226   :  { %1447 = vrsqrt.f32 %v672_v43  ;;  %v769_v16 = vmul.f32 %v2073_v41, %v730_v11 }
 0x227   :  { %v1438_v30 = vpop.eup %1437  ;;  %v673_v56 = vadd.f32 1e-05, %v641_v59  ;;  %v674_v40 = vadd.f32 1e-05, %v642_v51 }
 0x228   :  { %v1440_v0 = vpop.eup %1439  ;;  %v567_v2 = vpop.xlane.xlu1 %566  ;;  %v731_v4 = vmul.f32 %v1438_v30, %v1878_v62  ;;  %v808_v54 = vadd.f32 %v2079_v35, %v769_v16 }
 0x229   :  { %v570_v36 = vpop.xlane.xlu0 %569  ;;  %v732_v45 = vmul.f32 %v1440_v0, %v1867_v48  ;;  %1449 = vrsqrt.f32 %v673_v56  ;;  %v643_v7 = vmul.f32 0.015625, %v567_v2 }
 0x22a   :  { %v644_v44 = vmul.f32 0.015625, %v570_v36  ;;  %1451 = vrsqrt.f32 %v674_v40  ;;  %v770_v12 = vmul.f32 %v2073_v41, %v731_v4  ;;  %v874_v26 = vmul.f32 %v2087_v6, %v808_v54 }
 0x22b   :  { %v1442_v15 = vpop.eup %1441  ;;  %v771_v14 = vmul.f32 %v2073_v41, %v732_v45  ;;  %v675_v24 = vadd.f32 1e-05, %v643_v7  ;;  %vm841_vm2 = vcmp.gt.f32.partialorder %v808_v54, 0.0 }
 0x22c   :  { %v676_v62 = vadd.f32 1e-05, %v644_v44  ;;  %v1444_v47 = vpop.eup %1443  ;;  %v733_v13 = vmul.f32 %v1442_v15, %v1875_v57  ;;  %v573_v34 = vpop.xlane.xlu1 %572  ;;  %v809_v48 = vadd.f32 %v2079_v35, %v770_v12  ;;  %v906_v57 = vsel %vm841_vm2, %v808_v54, %v874_v26 }
 0x22d   :  { %v576_v52 = vpop.xlane.xlu0 %575  ;;  %v734_v9 = vmul.f32 %v1444_v47, %v1888_v60  ;;  %1453 = vrsqrt.f32 %v675_v24  ;;  %v645_v17 = vmul.f32 0.015625, %v573_v34  ;;  %v810_v51 = vadd.f32 %v2079_v35, %v771_v14 }
 0x22e   :  { %v646_v8 = vmul.f32 0.015625, %v576_v52  ;;  %v772_v43 = vmul.f32 %v2073_v41, %v733_v13  ;;  %1455 = vrsqrt.f32 %v676_v62  ;;  %vm842_vm3 = vcmp.gt.f32.partialorder %v809_v48, 0.0 }
 0x22f   :  { %v875_v25 = vmul.f32 %v2087_v6, %v809_v48  ;;  %v1446_v32 = vpop.eup %1445  ;;  %v677_v11 = vadd.f32 1e-05, %v645_v17  ;;  %v773_v30 = vmul.f32 %v2073_v41, %v734_v9  ;;  %vm843_vm4 = vcmp.gt.f32.partialorder %v810_v51, 0.0 }
 0x230   :  { %v678_v59 = vadd.f32 1e-05, %v646_v8  ;;  %v1448_v16 = vpop.eup %1447  ;;  %v735_v60 = vmul.f32 %v1446_v32, %v1893_v18  ;;  %v579_v56 = vpop.xlane.xlu1 %578  ;;  %v811_v2 = vadd.f32 %v2079_v35, %v772_v43  ;;  %v876_v26 = vmul.f32 %v2087_v6, %v810_v51 }
 0x231   :  { %v582_v40 = vpop.xlane.xlu0 %581  ;;  %v907_v0 = vsel %vm842_vm3, %v809_v48, %v875_v25  ;;  %v736_v36 = vmul.f32 %v1448_v16, %v1899_v5  ;;  %1457 = vrsqrt.f32 %v677_v11  ;;  %v647_v4 = vmul.f32 0.015625, %v579_v56 }
 0x232   :  { %v648_v45 = vmul.f32 0.015625, %v582_v40  ;;  %v774_v7 = vmul.f32 %v2073_v41, %v735_v60  ;;  %1459 = vrsqrt.f32 %v678_v59  ;;  %v938_v54 = vpack.c.bf16 %v907_v0, %v906_v57 }
 0x233   :  { %v1450_v44 = vpop.eup %1449  ;;  %v775_v12 = vmul.f32 %v2073_v41, %v736_v36  ;;  %v679_v15 = vadd.f32 1e-05, %v647_v4  ;;  %vm844_vm5 = vcmp.gt.f32.partialorder %v811_v2, 0.0  ;;  %v877_v47 = vmul.f32 %v2087_v6, %v811_v2 }
 0x234   :  { %v680_v18 = vadd.f32 1e-05, %v648_v45  ;;  %v1452_v14 = vpop.eup %1451  ;;  %v737_v24 = vmul.f32 %v1450_v44, %v1905_v37  ;;  %1390 = vmatprep.mubr.msk.bf16.mxu1 %vm345_vm1, %v938_v54  ;;  %v585_v5 = vpop.xlane.xlu1 %584  ;;  %v812_v13 = vadd.f32 %v2079_v35, %v773_v30  ;;  %v908_v37 = vsel %vm843_vm4, %v810_v51, %v876_v26 }
 0x235   :  { %v588_v62 = vpop.xlane.xlu0 %587  ;;  %v738_v34 = vmul.f32 %v1452_v14, %v1911_v42  ;;  %1461 = vrsqrt.f32 %v679_v15  ;;  %v649_v52 = vmul.f32 0.015625, %v585_v5  ;;  %v909_v17 = vsel %vm844_vm5, %v811_v2, %v877_v47 }
 0x236   :  { %v650_v48 = vmul.f32 0.015625, %v588_v62  ;;  %v776_v9 = vmul.f32 %v2073_v41, %v737_v24  ;;  %1463 = vrsqrt.f32 %v680_v18  ;;  %v939_v11 = vpack.c.bf16 %v909_v17, %v908_v37 }
 0x237   :  { %v1454_v8 = vpop.eup %1453  ;;  %v777_v43 = vmul.f32 %v2073_v41, %v738_v34  ;;  %v681_v25 = vadd.f32 1e-05, %v649_v52  ;;  %v813_v30 = vadd.f32 %v2079_v35, %v774_v7  ;;  %vm845_vm6 = vcmp.gt.f32.partialorder %v812_v13, 0.0 }
 0x238   :  { %v682_v32 = vadd.f32 1e-05, %v650_v48  ;;  %v1456_v59 = vpop.eup %1455  ;;  %v739_v57 = vmul.f32 %v1454_v8, %v1917_v50  ;;  %v591_v42 = vpop.xlane.xlu1 %590  ;;  %v878_v60 = vmul.f32 %v2087_v6, %v812_v13  ;;  %1391 = vmatmul.mubr.msk.bf16.vlgmr.msra.gmra.mrb[0].mxu1 %vm345_vm1, %v939_v11  ;;  %v814_v14 = vadd.f32 %v2079_v35, %v775_v12 }
 0x239   :  { %v594_v16 = vpop.xlane.xlu0 %593  ;;  %v740_v51 = vmul.f32 %v1456_v59, %v1923_v1  ;;  %1465 = vrsqrt.f32 %v681_v25  ;;  %v651_v56 = vmul.f32 0.015625, %v591_v42  ;;  %vm846_vm7 = vcmp.gt.f32.partialorder %v813_v30, 0.0 }
 0x23a   :  { %v652_v40 = vmul.f32 0.015625, %v594_v16  ;;  %v778_v0 = vmul.f32 %v2073_v41, %v739_v57  ;;  %1467 = vrsqrt.f32 %v682_v32  ;;  %v879_v50 = vmul.f32 %v2087_v6, %v813_v30 }
 0x23b   :  { %v1458_v2 = vpop.eup %1457  ;;  %v2123_v36 = vmul.f32 %v2073_v41, %v740_v51  ;;  %v683_v4 = vadd.f32 1e-05, %v651_v56  ;;  %v910_v7 = vsel %vm845_vm6, %v812_v13, %v878_v60  ;;  %v815_v24 = vadd.f32 %v2079_v35, %v776_v9 }
 0x23c   :  { %v684_v45 = vadd.f32 1e-05, %v652_v40  ;;  %v1460_v54 = vpop.eup %1459  ;;  %v741_v1 = vmul.f32 %v1458_v2, %v1929_v3  ;;  %v911_v44 = vsel %vm846_vm7, %v813_v30, %v879_v50  ;;  %v597_v15 = vpop.xlane.xlu1 %596  ;;  %vm847_vm8 = vcmp.gt.f32.partialorder %v814_v14, 0.0 }
 0x23d   :  { %v600_v18 = vpop.xlane.xlu0 %599  ;;  %v742_v5 = vmul.f32 %v1460_v54, %v1935_v10  ;;  %1469 = vrsqrt.f32 %v683_v4  ;;  %v940_v62 = vpack.c.bf16 %v911_v44, %v910_v7  ;;  %v653_v26 = vmul.f32 0.015625, %v597_v15 }
 0x23e   :  { %v780_v47 = vmul.f32 %v2073_v41, %v741_v1  ;;  %1471 = vrsqrt.f32 %v684_v45  ;;  %v654_v34 = vmul.f32 0.015625, %v600_v18  ;;  %vm848_vm9 = vcmp.gt.f32.partialorder %v815_v24, 0.0 }
 0x23f   :  { %v1462_v13 = vpop.eup %1461  ;;  %v2131_v3 = vmul.f32 %v2073_v41, %v742_v5  ;;  %1394 = vmatprep.mubr.msk.bf16.mxu1 %vm345_vm1, %v940_v62  ;;  %v685_v52 = vadd.f32 1e-05, %v653_v26  ;;  %v880_v12 = vmul.f32 %v2087_v6, %v814_v14  ;;  %v881_v37 = vmul.f32 %v2087_v6, %v815_v24 }
 0x240   :  { %v1464_v48 = vpop.eup %1463  ;;  %v743_v10 = vmul.f32 %v1462_v13, %v1941_v22  ;;  %v686_v9 = vadd.f32 1e-05, %v654_v34  ;;  %v603_v17 = vpop.xlane.xlu1 %602  ;;  %v816_v25 = vadd.f32 %v2079_v35, %v777_v43  ;;  %v817_v56 = vadd.f32 %v2079_v35, %v778_v0 }
 0x241   :  { %v606_v8 = vpop.xlane.xlu0 %605  ;;  %v744_v32 = vmul.f32 %v1464_v48, %v1947_v29  ;;  %1473 = vrsqrt.f32 %v685_v52  ;;  %v912_v11 = vsel %vm847_vm8, %v814_v14, %v880_v12  ;;  %v655_v59 = vmul.f32 0.015625, %v603_v17 }
 0x242   :  { %v782_v57 = vmul.f32 %v2073_v41, %v743_v10  ;;  %1475 = vrsqrt.f32 %v686_v9  ;;  %v913_v42 = vsel %vm848_vm9, %v815_v24, %v881_v37  ;;  %v656_v16 = vmul.f32 0.015625, %v606_v8 }
 0x243   :  { %v1466_v30 = vpop.eup %1465  ;;  %v2142_v22 = vmul.f32 %v2073_v41, %v744_v32  ;;  %v941_v60 = vpack.c.bf16 %v913_v42, %v912_v11  ;;  %v687_v51 = vadd.f32 1e-05, %v655_v59  ;;  %vm849_vm10 = vcmp.gt.f32.partialorder %v816_v25, 0.0 }
 0x244   :  { %v1468_v43 = vpop.eup %1467  ;;  %v745_v29 = vmul.f32 %v1466_v30, %v1953_v39  ;;  %v688_v40 = vadd.f32 1e-05, %v656_v16  ;;  %v882_v50 = vmul.f32 %v2087_v6, %v816_v25  ;;  %v609_v2 = vpop.xlane.xlu1 %608  ;;  %vm850_vm11 = vcmp.gt.f32.partialorder %v817_v56, 0.0 }
 0x245   :  { %v612_v4 = vpop.xlane.xlu0 %611  ;;  %v746_v45 = vmul.f32 %v1468_v43, %v1959_v46  ;;  %1395 = vmatmul.mubr.msk.bf16.gmra.mrb[4].mxu1 %vm345_vm1, %v941_v60  ;;  %1477 = vrsqrt.f32 %v687_v51  ;;  %v883_v7 = vmul.f32 %v2087_v6, %v817_v56  ;;  %v657_v39 = vmul.f32 0.015625, %v609_v2 }
 0x246   :  { %v2151_v54 = vmul.f32 %v2073_v41, %v745_v29  ;;  %1479 = vrsqrt.f32 %v688_v40  ;;  %v914_v0 = vsel %vm849_vm10, %v816_v25, %v882_v50  ;;  %v658_v18 = vmul.f32 0.015625, %v612_v4 }
 0x247   :  { %v1470_v1 = vpop.eup %1469  ;;  %v2154_v44 = vmul.f32 %v2073_v41, %v746_v45  ;;  %v915_v15 = vsel %vm850_vm11, %v817_v56, %v883_v7  ;;  %v818_v46 = vadd.f32 %v2079_v35, %v2123_v36  ;;  %v689_v62 = vadd.f32 1e-05, %v657_v39 }
 0x248   :  { %v1472_v14 = vpop.eup %1471  ;;  %v747_v24 = vmul.f32 %v1470_v1, %v1965_v53  ;;  %v942_v5 = vpack.c.bf16 %v915_v15, %v914_v0  ;;  %v819_v26 = vadd.f32 %v2079_v35, %v780_v47  ;;  %v615_v34 = vpop.xlane.xlu1 %614  ;;  %v690_v12 = vadd.f32 1e-05, %v658_v18 }
 0x249   :  { %v618_v13 = vpop.xlane.xlu0 %617  ;;  %v748_v52 = vmul.f32 %v1472_v14, %v1971_v58  ;;  %vm851_vm12 = vcmp.gt.f32.partialorder %v818_v46, 0.0  ;;  %v884_v48 = vmul.f32 %v2087_v6, %v818_v46  ;;  %1481 = vrsqrt.f32 %v689_v62 }
 0x24a   :  { %v2163_v10 = vmul.f32 %v2073_v41, %v747_v24  ;;  %1398 = vmatprep.mubr.msk.bf16.mxu1 %vm345_vm1, %v942_v5  ;;  %vm852_vm13 = vcmp.gt.f32.partialorder %v819_v26, 0.0  ;;  %v885_v53 = vmul.f32 %v2087_v6, %v819_v26  ;;  %1483 = vrsqrt.f32 %v690_v12 }
 0x24b   :  { %v1474_v36 = vpop.eup %1473  ;;  %v2168_v47 = vmul.f32 %v2073_v41, %v748_v52  ;;  %v916_v9 = vsel %vm851_vm12, %v818_v46, %v884_v48  ;;  %v659_v58 = vmul.f32 0.015625, %v615_v34  ;;  %v660_v25 = vmul.f32 0.015625, %v618_v13 }
 0x24c   :  { %v1476_v37 = vpop.eup %1475  ;;  %v749_v17 = vmul.f32 %v1474_v36, %v1980_v63  ;;  %v917_v8 = vsel %vm852_vm13, %v819_v26, %v885_v53  ;;  %v820_v32 = vadd.f32 %v2079_v35, %v2131_v3  ;;  %v621_v11 = vpop.xlane.xlu1 %620  ;;  %v821_v60 = vadd.f32 %v2079_v35, %v782_v57 }
 0x24d   :  { %v624_v59 = vpop.xlane.xlu0 %623  ;;  %v750_v42 = vmul.f32 %v1476_v37, %v1986_v19  ;;  %v943_v16 = vpack.c.bf16 %v917_v8, %v916_v9  ;;  %v691_v30 = vadd.f32 1e-05, %v659_v58  ;;  %v692_v56 = vadd.f32 1e-05, %v660_v25 }
 0x24e   :  { %v2176_v51 = vmul.f32 %v2073_v41, %v749_v17  ;;  %vm853_vm14 = vcmp.gt.f32.partialorder %v820_v32, 0.0  ;;  %v886_v63 = vmul.f32 %v2087_v6, %v820_v32  ;;  %vm854_vm15 = vcmp.gt.f32.partialorder %v821_v60, 0.0 }
 0x24f   :  { %v1478_v43 = vpop.eup %1477  ;;  %v789_v29 = vmul.f32 %v2073_v41, %v750_v42  ;;  %1399 = vmatmul.mubr.msk.bf16.gmra.mrb[8].mxu1 %vm345_vm1, %v943_v16  ;;  %1485 = vrsqrt.f32 %v691_v30  ;;  %v887_v19 = vmul.f32 %v2087_v6, %v821_v60  ;;  %v661_v50 = vmul.f32 0.015625, %v621_v11 }
 0x250   :  { %v1480_v3 = vpop.eup %1479  ;;  %v751_v40 = vmul.f32 %v1478_v43, %v1995_v28  ;;  %1487 = vrsqrt.f32 %v692_v56  ;;  %v918_v57 = vsel %vm853_vm14, %v820_v32, %v886_v63  ;;  %v627_v2 = vpop.xlane.xlu1 %626  ;;  %v662_v7 = vmul.f32 0.015625, %v624_v59 }
 0x251   :  { %v752_v4 = vmul.f32 %v1480_v3, %v2001_v33  ;;  %v919_v45 = vsel %vm854_vm15, %v821_v60, %v887_v19  ;;  %v822_v0 = vadd.f32 %v2079_v35, %v2142_v22  ;;  %v693_v15 = vadd.f32 1e-05, %v661_v50  ;;  %v630_v46 = vpop.xlane.xlu0 %629 }
 0x252   :  { %v790_v39 = vmul.f32 %v2073_v41, %v751_v40  ;;  %v944_v1 = vpack.c.bf16 %v919_v45, %v918_v57  ;;  %v823_v18 = vadd.f32 %v2079_v35, %v2151_v54  ;;  %v694_v14 = vadd.f32 1e-05, %v662_v7 }
 0x253   :  { %v791_v28 = vmul.f32 %v2073_v41, %v752_v4  ;;  %vm855_vm0 = vcmp.gt.f32.partialorder %v822_v0, 0.0  ;;  %v888_v24 = vmul.f32 %v2087_v6, %v822_v0  ;;  %v1482_v33 = vpop.eup %1481  ;;  %1489 = vrsqrt.f32 %v693_v15 }
 0x254   :  { %1402 = vmatprep.mubr.msk.bf16.mxu1 %vm345_vm1, %v944_v1  ;;  %vm856_vm2 = vcmp.gt.f32.partialorder %v823_v18, 0.0  ;;  %v889_v22 = vmul.f32 %v2087_v6, %v823_v18  ;;  %v663_v5 = vmul.f32 0.015625, %v627_v2  ;;  %v1484_v62 = vpop.eup %1483  ;;  %v753_v26 = vmul.f32 %v1482_v33, %v2010_v49  ;;  %v633_v53 = vpop.xlane.xlu1 %632 }
 0x255   :  { %1491 = vrsqrt.f32 %v694_v14  ;;  %v920_v54 = vsel %vm855_vm0, %v822_v0, %v888_v24  ;;  %v664_v34 = vmul.f32 0.015625, %v630_v46  ;;  %v754_v13 = vmul.f32 %v1484_v62, %v2016_v55 }
 0x256   :  { %v921_v52 = vsel %vm856_vm2, %v823_v18, %v889_v22  ;;  %v695_v12 = vadd.f32 1e-05, %v663_v5  ;;  %v824_v48 = vadd.f32 %v2079_v35, %v2154_v44  ;;  %v792_v36 = vmul.f32 %v2073_v41, %v753_v26 }
 0x257   :  { %v945_v9 = vpack.c.bf16 %v921_v52, %v920_v54  ;;  %v696_v58 = vadd.f32 1e-05, %v664_v34  ;;  %v825_v37 = vadd.f32 %v2079_v35, %v2163_v10  ;;  %v793_v49 = vmul.f32 %v2073_v41, %v754_v13 }
 0x258   :  { %1493 = vrsqrt.f32 %v695_v12  ;;  %vm857_vm3 = vcmp.gt.f32.partialorder %v824_v48, 0.0  ;;  %v890_v17 = vmul.f32 %v2087_v6, %v824_v48  ;;  %v665_v8 = vmul.f32 0.015625, %v633_v53 }
 0x259   :  { %v1486_v55 = vpop.eup %1485  ;;  %1403 = vmatmul.mubr.msk.bf16.gmra.mrb[12].mxu1 %vm345_vm1, %v945_v9  ;;  %1495 = vrsqrt.f32 %v696_v58  ;;  %vm858_vm4 = vcmp.gt.f32.partialorder %v825_v37, 0.0  ;;  %v891_v44 = vmul.f32 %v2087_v6, %v825_v37  ;;  %v826_v10 = vadd.f32 %v2079_v35, %v2168_v47 }
 0x25a   :  { %v1488_v25 = vpop.eup %1487  ;;  %v755_v32 = vmul.f32 %v1486_v55, %v2025_v21  ;;  %v922_v11 = vsel %vm857_vm3, %v824_v48, %v890_v17  ;;  %v827_v59 = vadd.f32 %v2079_v35, %v2176_v51  ;;  %v697_v30 = vadd.f32 1e-05, %v665_v8 }
 0x25b   :  { %v756_v42 = vmul.f32 %v1488_v25, %v2031_v20  ;;  %v923_v16 = vsel %vm858_vm4, %v825_v37, %v891_v44  ;;  %v828_v60 = vadd.f32 %v2079_v35, %v789_v29  ;;  %vm859_vm5 = vcmp.gt.f32.partialorder %v826_v10, 0.0 }
 0x25c   :  { %v794_v56 = vmul.f32 %v2073_v41, %v755_v32  ;;  %v946_v63 = vpack.c.bf16 %v923_v16, %v922_v11  ;;  %vm860_vm6 = vcmp.gt.f32.partialorder %v827_v59, 0.0  ;;  %1497 = vrsqrt.f32 %v697_v30 }
 0x25d   :  { %v795_v21 = vmul.f32 %v2073_v41, %v756_v42  ;;  %v892_v43 = vmul.f32 %v2087_v6, %v826_v10  ;;  %v893_v47 = vmul.f32 %v2087_v6, %v827_v59  ;;  %v1490_v19 = vpop.eup %1489  ;;  %v829_v20 = vadd.f32 %v2079_v35, %v790_v39 }
 0x25e   :  { %1406 = vmatprep.mubr.msk.bf16.mxu1 %vm345_vm1, %v946_v63  ;;  %vm861_vm7 = vcmp.gt.f32.partialorder %v828_v60, 0.0  ;;  %v894_v51 = vmul.f32 %v2087_v6, %v828_v60  ;;  %v830_v29 = vadd.f32 %v2079_v35, %v791_v28  ;;  %v757_v40 = vmul.f32 %v1490_v19, %v2037_v23 }
 0x25f   :  { %v1492_v3 = vpop.eup %1491  ;;  %v924_v57 = vsel %vm859_vm5, %v826_v10, %v892_v43  ;;  %v925_v50 = vsel %vm860_vm6, %v827_v59, %v893_v47  ;;  %v831_v2 = vadd.f32 %v2079_v35, %v792_v36  ;;  %vm862_vm8 = vcmp.gt.f32.partialorder %v829_v20, 0.0 }
 0x260   :  { %v758_v4 = vmul.f32 %v1492_v3, %v2043_v27  ;;  %v947_v45 = vpack.c.bf16 %v925_v50, %v924_v57  ;;  %v895_v7 = vmul.f32 %v2087_v6, %v829_v20  ;;  %v796_v0 = vmul.f32 %v2073_v41, %v757_v40 }
 0x261   :  { %v926_v39 = vsel %vm861_vm7, %v828_v60, %v894_v51  ;;  %vm863_vm9 = vcmp.gt.f32.partialorder %v830_v29, 0.0  ;;  %vm864_vm10 = vcmp.gt.f32.partialorder %v831_v2, 0.0  ;;  %v896_v18 = vmul.f32 %v2087_v6, %v830_v29 }
 0x262   :  { %v1494_v1 = vpop.eup %1493  ;;  %v797_v15 = vmul.f32 %v2073_v41, %v758_v4  ;;  %1407 = vmatmul.mubr.msk.bf16.gmra.mrb[16].mxu1 %vm345_vm1, %v947_v45  ;;  %v927_v23 = vsel %vm862_vm8, %v829_v20, %v895_v7  ;;  %v897_v46 = vmul.f32 %v2087_v6, %v831_v2  ;;  %v832_v24 = vadd.f32 %v2079_v35, %v793_v49 }
 0x263   :  { %v1496_v27 = vpop.eup %1495  ;;  %v759_v28 = vmul.f32 %v1494_v1, %v2049_v38  ;;  %v948_v14 = vpack.c.bf16 %v927_v23, %v926_v39  ;;  %v833_v33 = vadd.f32 %v2079_v35, %v794_v56  ;;  %v928_v5 = vsel %vm863_vm9, %v830_v29, %v896_v18 }
 0x264   :  { %v760_v22 = vmul.f32 %v1496_v27, %v2055_v61  ;;  %v929_v62 = vsel %vm864_vm10, %v831_v2, %v897_v46  ;;  %vm865_vm11 = vcmp.gt.f32.partialorder %v832_v24, 0.0  ;;  %v834_v54 = vadd.f32 %v2079_v35, %v795_v21 }
 0x265   :  { %v798_v26 = vmul.f32 %v2073_v41, %v759_v28  ;;  %1410 = vmatprep.mubr.msk.bf16.mxu1 %vm345_vm1, %v948_v14  ;;  %vm866_vm12 = vcmp.gt.f32.partialorder %v833_v33, 0.0  ;;  %v949_v34 = vpack.c.bf16 %v929_v62, %v928_v5  ;;  %v898_v38 = vmul.f32 %v2087_v6, %v832_v24 }
 0x266   :  { %v899_v13 = vmul.f32 %v2087_v6, %v833_v33  ;;  %v835_v52 = vadd.f32 %v2079_v35, %v796_v0  ;;  %v1498_v12 = vpop.eup %1497  ;;  %v799_v61 = vmul.f32 %v2073_v41, %v760_v22  ;;  %v836_v48 = vadd.f32 %v2079_v35, %v797_v15 }
 0x267   :  { %v837_v53 = vadd.f32 %v2079_v35, %v798_v26  ;;  %v761_v36 = vmul.f32 %v1498_v12, %v2061_v31  ;;  %v930_v9 = vsel %vm865_vm11, %v832_v24, %v898_v38  ;;  %vm867_vm14 = vcmp.gt.f32.partialorder %v834_v54, 0.0 }
 0x268   :  { %v931_v58 = vsel %vm866_vm12, %v833_v33, %v899_v13  ;;  %vm868_vm13 = vcmp.gt.f32.partialorder %v835_v52, 0.0  ;;  %v900_v49 = vmul.f32 %v2087_v6, %v834_v54  ;;  %v901_v17 = vmul.f32 %v2087_v6, %v835_v52 }
 0x269   :  { %v950_v37 = vpack.c.bf16 %v931_v58, %v930_v9  ;;  %v800_v55 = vmul.f32 %v2073_v41, %v761_v36  ;;  %vm870_vm15 = vcmp.gt.f32.partialorder %v837_v53, 0.0  ;;  %v902_v44 = vmul.f32 %v2087_v6, %v836_v48 }
 0x26a   :  { %1411 = vmatmul.mubr.msk.bf16.gmra.mrb[20].mxu1 %vm345_vm1, %v949_v34  ;;  %v903_v8 = vmul.f32 %v2087_v6, %v837_v53  ;;  %v933_v31 = vsel %vm868_vm13, %v835_v52, %v901_v17  ;;  %vm869_vm0 = vcmp.gt.f32.partialorder %v836_v48, 0.0  ;;  %v932_v11 = vsel %vm867_vm14, %v834_v54, %v900_v49 }
 0x26b   :  { %1414 = vmatprep.mubr.msk.bf16.mxu1 %vm345_vm1, %v950_v37  ;;  %v839_v32 = vadd.f32 %v2079_v35, %v800_v55  ;;  %v838_v10 = vadd.f32 %v2079_v35, %v799_v61  ;;  %v951_v59 = vpack.c.bf16 %v933_v31, %v932_v11  ;;  %v934_v42 = vsel %vm869_vm0, %v836_v48, %v902_v44  ;;  %v2259_v35 = vld [vmem:[%s2312_s7] ss:$0 sm:$0xff]  ;;  %s1523_s7 = smov [#allocation3]  }
 0x26c   :  { %v935_v25 = vsel %vm870_vm15, %v837_v53, %v903_v8  ;;  %s1239_s24 = sshll.u32 %s1523_s7, 4  ;;  %s1240_s24 = int_to_ptr.vmem [resolvable:$true] %s1239_s24 }
 0x26d   :  { %v952_v41 = vpack.c.bf16 %v935_v25, %v934_v42  ;;  %v905_v16 = vmul.f32 %v2087_v6, %v839_v32  ;;  %vm872_vm2 = vcmp.gt.f32.partialorder %v839_v32, 0.0  ;;  %v904_v30 = vmul.f32 %v2087_v6, %v838_v10  ;;  %s1499_s25 = scalar_lea.vmem %s1240_s24, 4096  ;;  %p1504_p1 = scmp.lt.s32.totalorder %s1240_s24, %s1240_s24 }
 0x26e   :  { %vm871_vm3 = vcmp.gt.f32.partialorder %v838_v10, 0.0  ;;  %p1500_p0 = scmp.ne.s32.totalorder %s1240_s24, %s1499_s25  ;;  %p1505_p2 = scmp.lt.s32.totalorder %s1499_s25, %s1499_s25 }
 0x26f   :  { %v937_v60 = vsel %vm872_vm2, %v839_v32, %v905_v16  ;;  %v936_v56 = vsel %vm871_vm3, %v838_v10, %v904_v30 }
 0x270   :  { %v953_v63 = vpack.c.bf16 %v937_v60, %v936_v56  ;;  %p1506_p3 = por %p1505_p2, %p1504_p1 }
 0x272   :  { %1415 = vmatmul.mubr.msk.bf16.gmra.mrb[24].mxu1 %vm345_vm1, %v951_v59  ;;  %p1507_p4 = pnand %p1506_p3, %p1500_p0 }
 0x273   :  { %1418 = vmatprep.mubr.msk.bf16.mxu1 %vm345_vm1, %v952_v41 }
 0x27a   :  { %1419 = vmatmul.mubr.msk.bf16.gmra.mrb[28].mxu1 %vm345_vm1, %v953_v63 }
 0x30b   :  { %v1392_v21 = vpop.f32.mrb[0].mxu1 }
 0x30c   :  { %v1084_v43 = vadd.f32 %v1392_v21, %v2259_v35  ;;  %v1075_v47 = vpop.f32.mrb[1].mxu1 }
 0x30d   :  { %v1076_v6 = vadd.f32 %v2259_v35, %v1075_v47  ;;  %v1393_v19 = vpop.f32.mrb[2].mxu1 }
 0x30e   :  { %1204 = vst [vmem:[#allocation3 + $0x10] sm:$0xff] %v1084_v43  ;;  %v1087_v20 = vadd.f32 %v1393_v19, %v2259_v35  ;;  %v1078_v51 = vpop.f32.mrb[3].mxu1 }
 0x30f   :  { %1202 = vst [vmem:[#allocation3] sm:$0xff] %v1076_v6  ;;  %v1079_v29 = vadd.f32 %v2259_v35, %v1078_v51 }
 0x310   :  { %1205 = vst [vmem:[#allocation3 + $0x18] sm:$0xff] %v1087_v20 }
 0x311   :  { %1203 = vst [vmem:[#allocation3 + $0x8] sm:$0xff] %v1079_v29 }
 0x318   :  { %v1396_v3 = vpop.f32.mrb[4].mxu1 }
 0x319   :  { %v1100_v40 = vadd.f32 %v1396_v3, %v2259_v35  ;;  %v1091_v57 = vpop.f32.mrb[5].mxu1 }
 0x31a   :  { %v1092_v50 = vadd.f32 %v2259_v35, %v1091_v57  ;;  %v1397_v2 = vpop.f32.mrb[6].mxu1 }
 0x31b   :  { %1208 = vst [vmem:[#allocation3 + $0x30] sm:$0xff] %v1100_v40  ;;  %v1103_v4 = vadd.f32 %v1397_v2, %v2259_v35  ;;  %v1094_v45 = vpop.f32.mrb[7].mxu1 }
 0x31c   :  { %1206 = vst [vmem:[#allocation3 + $0x20] sm:$0xff] %v1092_v50  ;;  %v1095_v7 = vadd.f32 %v2259_v35, %v1094_v45 }
 0x31d   :  { %1209 = vst [vmem:[#allocation3 + $0x38] sm:$0xff] %v1103_v4 }
 0x31e   :  { %1207 = vst [vmem:[#allocation3 + $0x28] sm:$0xff] %v1095_v7 }
 0x322   :  { %v1400_v0 = vpop.f32.mrb[8].mxu1 }
 0x323   :  { %v1116_v39 = vadd.f32 %v1400_v0, %v2259_v35  ;;  %v1107_v1 = vpop.f32.mrb[9].mxu1 }
 0x324   :  { %v1108_v15 = vadd.f32 %v2259_v35, %v1107_v1  ;;  %v1401_v23 = vpop.f32.mrb[10].mxu1 }
 0x325   :  { %1212 = vst [vmem:[#allocation3 + $0x50] sm:$0xff] %v1116_v39  ;;  %v1119_v18 = vadd.f32 %v1401_v23, %v2259_v35  ;;  %v1110_v46 = vpop.f32.mrb[11].mxu1 }
 0x326   :  { %1210 = vst [vmem:[#allocation3 + $0x40] sm:$0xff] %v1108_v15  ;;  %v1111_v27 = vadd.f32 %v2259_v35, %v1110_v46 }
 0x327   :  { %1213 = vst [vmem:[#allocation3 + $0x58] sm:$0xff] %v1119_v18 }
 0x328   :  { %1211 = vst [vmem:[#allocation3 + $0x48] sm:$0xff] %v1111_v27 }
 0x32c   :  { %v1404_v28 = vpop.f32.mrb[12].mxu1 }
 0x32d   :  { %v1132_v14 = vadd.f32 %v1404_v28, %v2259_v35  ;;  %v1123_v24 = vpop.f32.mrb[13].mxu1 }
 0x32e   :  { %v1124_v33 = vadd.f32 %v2259_v35, %v1123_v24  ;;  %v1405_v22 = vpop.f32.mrb[14].mxu1 }
 0x32f   :  { %1216 = vst [vmem:[#allocation3 + $0x70] sm:$0xff] %v1132_v14  ;;  %v1135_v5 = vadd.f32 %v1405_v22, %v2259_v35  ;;  %v1126_v62 = vpop.f32.mrb[15].mxu1 }
 0x330   :  { %1214 = vst [vmem:[#allocation3 + $0x60] sm:$0xff] %v1124_v33  ;;  %v1127_v26 = vadd.f32 %v2259_v35, %v1126_v62 }
 0x331   :  { %1217 = vst [vmem:[#allocation3 + $0x78] sm:$0xff] %v1135_v5 }
 0x332   :  { %1215 = vst [vmem:[#allocation3 + $0x68] sm:$0xff] %v1127_v26 }
 0x335   :  { %v1408_v54 = vpop.f32.mrb[16].mxu1 }
 0x336   :  { %v1148_v34 = vadd.f32 %v1408_v54, %v2259_v35  ;;  %v1139_v38 = vpop.f32.mrb[17].mxu1 }
 0x337   :  { %v1140_v13 = vadd.f32 %v2259_v35, %v1139_v38  ;;  %v1409_v52 = vpop.f32.mrb[18].mxu1 }
 0x338   :  { %1220 = vst [vmem:[#allocation3 + $0x90] sm:$0xff] %v1148_v34  ;;  %v1151_v12 = vadd.f32 %v1409_v52, %v2259_v35  ;;  %v1142_v61 = vpop.f32.mrb[19].mxu1 }
 0x339   :  { %1218 = vst [vmem:[#allocation3 + $0x80] sm:$0xff] %v1140_v13  ;;  %v1143_v48 = vadd.f32 %v2259_v35, %v1142_v61 }
 0x33a   :  { %1221 = vst [vmem:[#allocation3 + $0x98] sm:$0xff] %v1151_v12 }
 0x33b   :  { %1219 = vst [vmem:[#allocation3 + $0x88] sm:$0xff] %v1143_v48 }
 0x33d   :  { %v1412_v53 = vpop.f32.mrb[20].mxu1 }
 0x33e   :  { %v1164_v36 = vadd.f32 %v1412_v53, %v2259_v35  ;;  %v1155_v9 = vpop.f32.mrb[21].mxu1 }
 0x33f   :  { %v1156_v58 = vadd.f32 %v2259_v35, %v1155_v9  ;;  %v1413_v37 = vpop.f32.mrb[22].mxu1 }
 0x340   :  { %1224 = vst [vmem:[#allocation3 + $0xb0] sm:$0xff] %v1164_v36  ;;  %v1167_v49 = vadd.f32 %v1413_v37, %v2259_v35  ;;  %v1158_v17 = vpop.f32.mrb[23].mxu1 }
 0x341   :  { %1222 = vst [vmem:[#allocation3 + $0xa0] sm:$0xff] %v1156_v58  ;;  %v1159_v55 = vadd.f32 %v2259_v35, %v1158_v17 }
 0x342   :  { %1225 = vst [vmem:[#allocation3 + $0xb8] sm:$0xff] %v1167_v49 }
 0x343   :  { %1223 = vst [vmem:[#allocation3 + $0xa8] sm:$0xff] %v1159_v55 }
 0x345   :  { %v1416_v44 = vpop.f32.mrb[24].mxu1 }
 0x346   :  { %v1180_v8 = vadd.f32 %v1416_v44, %v2259_v35  ;;  %v1171_v31 = vpop.f32.mrb[25].mxu1 }
 0x347   :  { %v1172_v25 = vadd.f32 %v2259_v35, %v1171_v31  ;;  %v1417_v32 = vpop.f32.mrb[26].mxu1 }
 0x348   :  { %1228 = vst [vmem:[#allocation3 + $0xd0] sm:$0xff] %v1180_v8  ;;  %v1183_v11 = vadd.f32 %v1417_v32, %v2259_v35  ;;  %v1174_v10 = vpop.f32.mrb[27].mxu1 }
 0x349   :  { %1226 = vst [vmem:[#allocation3 + $0xc0] sm:$0xff] %v1172_v25  ;;  %v1175_v59 = vadd.f32 %v2259_v35, %v1174_v10 }
 0x34a   :  { %1229 = vst [vmem:[#allocation3 + $0xd8] sm:$0xff] %v1183_v11 }
 0x34b   :  { %1227 = vst [vmem:[#allocation3 + $0xc8] sm:$0xff] %v1175_v59 }
 0x34d   :  { %v1420_v42 = vpop.f32.mrb[28].mxu1 }
 0x34e   :  { %v1196_v41 = vadd.f32 %v1420_v42, %v2259_v35  ;;  %v1187_v16 = vpop.f32.mrb[29].mxu1 }
 0x34f   :  { %v1188_v30 = vadd.f32 %v2259_v35, %v1187_v16  ;;  %v1421_v60 = vpop.f32.mrb[30].mxu1 }
 0x350   :  { %1232 = vst [vmem:[#allocation3 + $0xf0] sm:$0xff] %v1196_v41  ;;  %v1199_v56 = vadd.f32 %v1421_v60, %v2259_v35  ;;  %v1190_v63 = vpop.f32.mrb[31].mxu1 }
 0x351   :  { %1230 = vst [vmem:[#allocation3 + $0xe0] sm:$0xff] %v1188_v30  ;;  %v1191_v21 = vadd.f32 %v2259_v35, %v1190_v63 }
 0x352   :  { %1233 = vst [vmem:[#allocation3 + $0xf8] sm:$0xff] %v1199_v56 }
 0x353   :  { %1231 = vst [vmem:[#allocation3 + $0xe8] sm:$0xff] %v1191_v21 }
 0x354   :  { %1510 = shalt.err (!%p1507_p4)
}
 0x355   :  { %s1511_s28 = scalar_lea.hbm %s2313_s8, 4096 }
 0x356   :  { %p1512_p5 = scmp.ne.s32.totalorder %s2313_s8, %s1511_s28  ;;  %p1515_p6 = scmp.lt.u32.totalorder %s1511_s28, %s2313_s8 }
 0x358   :  { %p1517_p7 = pnand %p1515_p6, %p1512_p5 }
 0x35a   :  { %1520 = shalt.err (!%p1517_p7)
}
 0x35b   :  { %s1524_s10 = smov 128   ;;  %s1525_s11 = smov 8  }
 0x35c   :  { %1245 = dma.vmem_to_hbm [thread:$0]  %s1240_s24, 4096, %s2313_s8, [#allocation4], %s1524_s10, %s1524_s10, %s1525_s11  }
 0x35d   :  { %1521 = dma.done.wait [#allocation4], 4096  }
 0x35e   :  { %1522 = vsyncadd [#allocation4], 4294963200 }
 0x35f   :  { %1249 = vsyncpa [#allocation4], 1 }

</bundles_post_ra>
